<compile_context>
chip_gen: v6e
topology: v6e:2x2x1
jax: 0.10.0
libtpu: 0.0.40
codegen_flags: <defaults>
</compile_context>

<pallas_src>
import functools

import jax
import jax.numpy as jnp
from jax.experimental import pallas as pl
from jax.experimental.pallas import tpu as pltpu


def _round_up(n: int, m: int) -> int:
    return ((n + m - 1) // m) * m


def mlp_kernel(x_ref, w1_ref, b1_ref, w2_ref, b2_ref, o_ref):
    # Hidden layer: relu(x @ W1 + b1)   (W1 already (in, out) layout, H padded)
    h = jnp.dot(x_ref[...], w1_ref[...], preferred_element_type=jnp.float32)
    h = jnp.maximum(h + b1_ref[...], 0.0)          # f32 VPU epilogue (v5e-safe)
    # Output layer: sigmoid(h @ W2 + b2)
    z = jnp.dot(h.astype(w2_ref.dtype), w2_ref[...],
                preferred_element_type=jnp.float32)
    z = z + b2_ref[...]
    o_ref[...] = jax.nn.sigmoid(z).astype(o_ref.dtype)


def pack_params(w1, b1, w2, b2, mxu_dtype=jnp.float32):
    """One-time prep (outside the hot path).

    PyTorch nn.Linear layout in:  w1 (H, K), b1 (H,), w2 (O, H), b2 (O,).
    Out: (in, out)-layout weights with ONLY the hidden dim padded to 128.
    K and O stay at their true widths so x / out HBM traffic is unpadded.
    """
    H, K = w1.shape
    O, H2 = w2.shape
    assert H == H2
    H_pad = _round_up(H, 128)

    w1_p = jnp.zeros((K, H_pad), mxu_dtype).at[:, :H].set(
        jnp.asarray(w1, mxu_dtype).T)
    b1_p = jnp.zeros((1, H_pad), jnp.float32).at[0, :H].set(
        jnp.asarray(b1, jnp.float32))
    w2_p = jnp.zeros((H_pad, O), mxu_dtype).at[:H, :].set(
        jnp.asarray(w2, mxu_dtype).T)
    b2_p = jnp.asarray(b2, jnp.float32).reshape(1, O)
    return (w1_p, b1_p, w2_p, b2_p, (K, H, O))


@functools.partial(jax.jit, static_argnames=("batch_tile",))
def _pallas_forward(x, w1_p, b1_p, w2_p, b2_p, *, batch_tile):
    B_pad, K = x.shape
    H_pad = w1_p.shape[1]
    O = w2_p.shape[1]
    grid = (B_pad // batch_tile,)

    return pl.pallas_call(
        mlp_kernel,
        out_shape=jax.ShapeDtypeStruct((B_pad, O), jnp.float32),
        grid=grid,
        in_specs=[
            # x: tiled along batch only; last dim == full K (legal even if <128)
            pl.BlockSpec((batch_tile, K), lambda i: (i, 0)),
            # weights/biases: constant across grid steps -> VMEM-resident
            pl.BlockSpec((K, H_pad), lambda i: (0, 0)),
            pl.BlockSpec((1, H_pad), lambda i: (0, 0)),
            pl.BlockSpec((H_pad, O), lambda i: (0, 0)),
            pl.BlockSpec((1, O), lambda i: (0, 0)),
        ],
        # output at its true width O (no padded writes / slice re-read)
        out_specs=pl.BlockSpec((batch_tile, O), lambda i: (i, 0)),
        compiler_params=pltpu.CompilerParams(
            dimension_semantics=("parallel",)),
    )(x, w1_p, b1_p, w2_p, b2_p)


@jax.jit
def _xla_forward(x, w1_p, b1_p, w2_p, b2_p):
    # Tiny-batch fallback: fused XLA dots beat pallas_call launch overhead.
    h = jnp.maximum(
        jnp.dot(x, w1_p, preferred_element_type=jnp.float32) + b1_p, 0.0)
    z = jnp.dot(h.astype(w2_p.dtype), w2_p,
                preferred_element_type=jnp.float32) + b2_p
    return jax.nn.sigmoid(z)


_SMALL_BATCH_XLA = 256   # below this, dispatch to plain XLA
_MAX_BATCH_TILE = 2048   # ~256 KiB x-tile (f32) -> well under VMEM everywhere


def neural_network_forward(x, packed_params, *,
                           small_batch_threshold=_SMALL_BATCH_XLA):
    """x: (B, num_inputs) float; packed_params: result of pack_params()."""
    w1_p, b1_p, w2_p, b2_p, (K, H, O) = packed_params
    B = x.shape[0]
    x = jnp.asarray(x, w1_p.dtype)

    if B < small_batch_threshold:
        return _xla_forward(x, w1_p, b1_p, w2_p, b2_p)

    # Adaptive batch tile: >= 2 grid steps (v7x megacore), tiles <= 2048 rows,
    # TB a multiple of 8 sublanes, B_pad as close to B as possible.
    n_tiles = max(2, pl.cdiv(B, _MAX_BATCH_TILE))
    TB = _round_up(pl.cdiv(B, n_tiles), 8)
    grid_len = pl.cdiv(B, TB)
    B_pad = grid_len * TB

    if B_pad != B:
        x = jnp.zeros((B_pad, K), x.dtype).at[:B].set(x)

    out = _pallas_forward(x, w1_p, b1_p, w2_p, b2_p, batch_tile=TB)
    return out[:B] if B_pad != B else out


def reference_forward(x, w1, b1, w2, b2):
    h = jnp.maximum(x @ w1.T + b1, 0.0)
    return jax.nn.sigmoid(h @ w2.T + b2)


if __name__ == "__main__":
    # Small layer sizes consistent with the module's two Linear layers.
    num_inputs, num_hidden, num_outputs = 32, 64, 16
    batch = 1024          # large enough to exercise the tiled Pallas path

    key = jax.random.PRNGKey(0)
    kx, kw1, kb1, kw2, kb2 = jax.random.split(key, 5)

    x = jax.random.normal(kx, (batch, num_inputs), dtype=jnp.float32)
    # Deterministic init mimicking nn.Linear's uniform(-1/sqrt(fan_in), ...).
    bound1 = 1.0 / jnp.sqrt(num_inputs)
    bound2 = 1.0 / jnp.sqrt(num_hidden)
    w1 = jax.random.uniform(kw1, (num_hidden, num_inputs), jnp.float32, -bound1, bound1)
    b1 = jax.random.uniform(kb1, (num_hidden,), jnp.float32, -bound1, bound1)
    w2 = jax.random.uniform(kw2, (num_outputs, num_hidden), jnp.float32, -bound2, bound2)
    b2 = jax.random.uniform(kb2, (num_outputs,), jnp.float32, -bound2, bound2)

    ref = reference_forward(x, w1, b1, w2, b2)

    # --- f32 Pallas path (exact comparison) -------------------------------
    packed_f32 = pack_params(w1, b1, w2, b2, mxu_dtype=jnp.float32)
    out = jax.block_until_ready(neural_network_forward(x, packed_f32))
    assert out.shape == (batch, num_outputs)
    assert jnp.allclose(out, ref, atol=1e-5, rtol=1e-5)

    # --- tiny-batch dispatch path ------------------------------------------
    out_small = jax.block_until_ready(neural_network_forward(x[:8], packed_f32))
    assert out_small.shape == (8, num_outputs)
    assert jnp.allclose(out_small, ref[:8], atol=1e-5, rtol=1e-5)

    # --- bf16 MXU-operand path (v6e/v7x recommendation, relaxed tolerance) --
    packed_bf16 = pack_params(w1, b1, w2, b2, mxu_dtype=jnp.bfloat16)
    out_bf16 = jax.block_until_ready(neural_network_forward(x, packed_bf16))
    assert jnp.allclose(out_bf16, ref, atol=2e-2, rtol=2e-2)

    print("KERNEL_OK")
</pallas_src>

<mosaic_0001>
module attributes {stable_mosaic.version = 11 : i64} {
  func.func @mlp_kernel(%arg0: i32, %arg1: memref<512x32xf32, #tpu.memory_space<vmem>>, %arg2: memref<32x128xf32, #tpu.memory_space<vmem>>, %arg3: memref<1x128xf32, #tpu.memory_space<vmem>>, %arg4: memref<128x16xf32, #tpu.memory_space<vmem>>, %arg5: memref<1x16xf32, #tpu.memory_space<vmem>>, %arg6: memref<512x16xf32, #tpu.memory_space<vmem>>) attributes {dimension_semantics = [#tpu.dimension_semantics<parallel>], iteration_bounds = array<i64: 2>, scalar_prefetch = 0 : i64, scratch_operands = 0 : i64, tpu.core_type = #tpu.core_type<tc>, window_params = [{transform_indices = @transform_0, window_bounds = array<i64: 512, 32>}, {pipeline_mode = #tpu.pipeline_mode<synchronous>, transform_indices = @transform_1, window_bounds = array<i64: 32, 128>}, {pipeline_mode = #tpu.pipeline_mode<synchronous>, transform_indices = @transform_2, window_bounds = array<i64: 1, 128>}, {pipeline_mode = #tpu.pipeline_mode<synchronous>, transform_indices = @transform_3, window_bounds = array<i64: 128, 16>}, {pipeline_mode = #tpu.pipeline_mode<synchronous>, transform_indices = @transform_4, window_bounds = array<i64: 1, 16>}, {transform_indices = @transform_5, window_bounds = array<i64: 512, 16>}]} {
    %c0 = arith.constant 0 : index
    %c0_0 = arith.constant 0 : index
    %0 = vector.load %arg1[%c0, %c0_0] : memref<512x32xf32, #tpu.memory_space<vmem>>, vector<512x32xf32>
    %c0_1 = arith.constant 0 : index
    %c0_2 = arith.constant 0 : index
    %1 = vector.load %arg2[%c0_1, %c0_2] : memref<32x128xf32, #tpu.memory_space<vmem>>, vector<32x128xf32>
    %cst = arith.constant dense<0.000000e+00> : vector<512x128xf32>
    %2 = tpu.matmul %0, %1, %cst {dimension_numbers = #tpu.dot_dimension_numbers<[1], [0], [0], [1], [0, 0, 1, 1], [], []>} : vector<512x32xf32>, vector<32x128xf32>, vector<512x128xf32> -> vector<512x128xf32>
    %c0_3 = arith.constant 0 : index
    %c0_4 = arith.constant 0 : index
    %3 = vector.load %arg3[%c0_3, %c0_4] : memref<1x128xf32, #tpu.memory_space<vmem>>, vector<1x128xf32>
    %4 = vector.broadcast %3 : vector<1x128xf32> to vector<512x128xf32>
    %5 = arith.addf %2, %4 : vector<512x128xf32>
    %cst_5 = arith.constant 0.000000e+00 : f32
    %6 = vector.broadcast %cst_5 : f32 to vector<512x128xf32>
    %7 = arith.maximumf %5, %6 : vector<512x128xf32>
    %c0_6 = arith.constant 0 : index
    %c0_7 = arith.constant 0 : index
    %8 = vector.load %arg4[%c0_6, %c0_7] : memref<128x16xf32, #tpu.memory_space<vmem>>, vector<128x16xf32>
    %cst_8 = arith.constant dense<0.000000e+00> : vector<512x16xf32>
    %9 = tpu.matmul %7, %8, %cst_8 {dimension_numbers = #tpu.dot_dimension_numbers<[1], [0], [0], [1], [0, 0, 1, 1], [], []>} : vector<512x128xf32>, vector<128x16xf32>, vector<512x16xf32> -> vector<512x16xf32>
    %c0_9 = arith.constant 0 : index
    %c0_10 = arith.constant 0 : index
    %10 = vector.load %arg5[%c0_9, %c0_10] : memref<1x16xf32, #tpu.memory_space<vmem>>, vector<1x16xf32>
    %11 = vector.broadcast %10 : vector<1x16xf32> to vector<512x16xf32>
    %12 = arith.addf %9, %11 : vector<512x16xf32>
    %13 = arith.negf %12 : vector<512x16xf32>
    %14 = math.exp %13 : vector<512x16xf32>
    %cst_11 = arith.constant 1.000000e+00 : f32
    %15 = vector.broadcast %cst_11 : f32 to vector<512x16xf32>
    %16 = arith.addf %15, %14 : vector<512x16xf32>
    %17 = arith.divf %15, %16 : vector<512x16xf32>
    %c0_12 = arith.constant 0 : index
    %c0_13 = arith.constant 0 : index
    %18 = vector.load %arg6[%c0_12, %c0_13] : memref<512x16xf32, #tpu.memory_space<vmem>>, vector<512x16xf32>
    tpu.vector_store %arg6[%c0_12, %c0_13], %17 {strides = array<i32>} : memref<512x16xf32, #tpu.memory_space<vmem>>, vector<512x16xf32>,
    return
  }
  func.func @transform_0(%arg0: i32) -> (i32, i32) {
    %c0_i32 = arith.constant 0 : i32
    %c0_i32_0 = arith.constant 0 : i32
    return %arg0, %c0_i32 : i32, i32
  }
  func.func @transform_1(%arg0: i32) -> (i32, i32) {
    %c0_i32 = arith.constant 0 : i32
    %c0_i32_0 = arith.constant 0 : i32
    %c0_i32_1 = arith.constant 0 : i32
    return %c0_i32, %c0_i32_0 : i32, i32
  }
  func.func @transform_2(%arg0: i32) -> (i32, i32) {
    %c0_i32 = arith.constant 0 : i32
    %c0_i32_0 = arith.constant 0 : i32
    %c0_i32_1 = arith.constant 0 : i32
    return %c0_i32, %c0_i32_0 : i32, i32
  }
  func.func @transform_3(%arg0: i32) -> (i32, i32) {
    %c0_i32 = arith.constant 0 : i32
    %c0_i32_0 = arith.constant 0 : i32
    %c0_i32_1 = arith.constant 0 : i32
    return %c0_i32, %c0_i32_0 : i32, i32
  }
  func.func @transform_4(%arg0: i32) -> (i32, i32) {
    %c0_i32 = arith.constant 0 : i32
    %c0_i32_0 = arith.constant 0 : i32
    %c0_i32_1 = arith.constant 0 : i32
    return %c0_i32, %c0_i32_0 : i32, i32
  }
  func.func @transform_5(%arg0: i32) -> (i32, i32) {
    %c0_i32 = arith.constant 0 : i32
    %c0_i32_0 = arith.constant 0 : i32
    return %arg0, %c0_i32 : i32, i32
  }
}

</mosaic_0001>

<bundles_post_ra>
// kernel: _pallas_forward.1
= control target key start
LH: loop header
LB: loop body
LE: loop exit
PB: predicated region body
PF: predicated region fallthrough
CT: control target
= control target key end

     0   :  { %s2713_s18 = smov 0   ;;  %s3195_s0 = inlined_call_operand.vmem [shape: f32[1024,32], index: 0, kind: input, shape index: {}]   ;;  %s3196_s1 = inlined_call_operand.vmem [shape: f32[32,128], index: 1, kind: input, shape index: {}]   ;;  %s3197_s2 = inlined_call_operand.vmem [shape: f32[1,128], index: 2, kind: input, shape index: {}]   ;;  %s3198_s3 = inlined_call_operand.vmem [shape: f32[128,16], index: 3, kind: input, shape index: {}]   ;;  %s3199_s4 = inlined_call_operand.vmem [shape: f32[1,16], index: 4, kind: input, shape index: {}]   ;;  %s3200_s5 = inlined_call_operand.vmem [shape: f32[1024,16], index: 5, kind: output, shape index: {}]  }
   0x1 LB: > { %s1858_s19 = sadd.s32 4294967295, %s2681_s18   ;;  %p1862_p0 = scmp.ge.s32.totalorder %s2681_s18, 1  ;;  %s2681_s18 = sphi %s2713_s18, %s15_s18  }
   0x2   : > { %p188_p1 = scmp.lt.s32.totalorder %s2681_s18, 3 }
   0x4   : > { %p189_p2 = pnand %p1862_p0, %p188_p1 }
   0x5   : > { %s1863_s24 = sshll.u32 (!%p189_p2), %s1858_s19, 6 }
   0x6   : > { %192 = sbr.rel (%p189_p2) target bundleno = 575 (0x23f), region = 40  ;;  %p217_p3 = scmp.lt.s32.totalorder (!%p189_p2), %s1863_s24, 127 }
   0xb   : > { %v295_v0 = vld [vmem:[%s3196_s1 + $0x18] sm:$0xff]  ;;  %v294_v1 = vld [vmem:[%s3196_s1 + $0x10] sm:$0xff]  ;;  %v293_v2 = vld [vmem:[%s3196_s1 + $0x8] sm:$0xff]  ;;  %s3202_s24 = smov (!%p217_p3, %s1863_s24), 127  ;;  %vm303_vm0 = vcmask 261120   ;;  %vm1737_vm1 = vcmask 130048  }
   0xc   : > { %2147 = vmatprep.subr.mxu0 %v295_v0  ;;  %v292_v3 = vld [vmem:[%s3196_s1] sm:$0xff]  ;;  %s1864_s29 = sshll.u32 %s3202_s24, 3  ;;  %v960_v4 = vld [vmem:[%s3198_s3 + $0x78] sm:$0xff]  ;;  %v959_v8 = vld [vmem:[%s3198_s3 + $0x70] sm:$0xff] }
   0xd   : > { %2148 = vmatpush3.msra.mxu0 %v295_v0  ;;  %s2744_s9 = scalar_lea.vmem %s3195_s0, %s1864_s29  ;;  %2379 = vmatprep.subr.mxu1 %v960_v4  ;;  %v958_v10 = vld [vmem:[%s3198_s3 + $0x68] sm:$0xff]  ;;  %v957_v12 = vld [vmem:[%s3198_s3 + $0x60] sm:$0xff]  ;;  %v956_v14 = vld [vmem:[%s3198_s3 + $0x58] sm:$0xff]  ;;  %s3014_s26 = scalar_lea.vmem %s3200_s5, %s1864_s29 }
   0xe   : > { %2149 = vmatprep.subr.mxu0 %v294_v1  ;;  %v228_v5 = vld [vmem:[%s2744_s9] sm:$0xff]  ;;  %v229_v6 = vld [vmem:[%s2744_s9 + $0x8] sm:$0xff]  ;;  %v230_v7 = vld [vmem:[%s2744_s9 + $0x10] sm:$0xff]  ;;  %2395 = vmatpush3.msra.mxu1 %v960_v4 }
   0xf   : > { %2150 = vmatpush3.msra.mxu0 %v294_v1  ;;  %2155 = vmatprep.mubr.msk.f32.mxu0 %vm303_vm0, %v228_v5  ;;  %v231_v9 = vld [vmem:[%s2744_s9 + $0x18] sm:$0xff]  ;;  %v232_v11 = vld [vmem:[%s2744_s9 + $0x20] sm:$0xff]  ;;  %v233_v13 = vld [vmem:[%s2744_s9 + $0x28] sm:$0xff] }
  0x10   : > { %2151 = vmatprep.subr.mxu0 %v293_v2  ;;  %2380 = vmatprep.subr.mxu1 %v959_v8  ;;  %v234_v15 = vld [vmem:[%s2744_s9 + $0x30] sm:$0xff]  ;;  %v235_v17 = vld [vmem:[%s2744_s9 + $0x38] sm:$0xff]  ;;  %v236_v18 = vld [vmem:[%s2744_s9 + $0x40] sm:$0xff] }
  0x11   : > { %2152 = vmatpush3.msra.mxu0 %v293_v2  ;;  %2396 = vmatpush3.msra.mxu1 %v959_v8  ;;  %v955_v16 = vld [vmem:[%s3198_s3 + $0x50] sm:$0xff]  ;;  %v237_v19 = vld [vmem:[%s2744_s9 + $0x48] sm:$0xff]  ;;  %v239_v21 = vld [vmem:[%s2744_s9 + $0x58] sm:$0xff] }
  0x12   : > { %2153 = vmatprep.subr.mxu0 %v292_v3  ;;  %2381 = vmatprep.subr.mxu1 %v958_v10  ;;  %v238_v20 = vld [vmem:[%s2744_s9 + $0x50] sm:$0xff]  ;;  %v240_v22 = vld [vmem:[%s2744_s9 + $0x60] sm:$0xff]  ;;  %v954_v23 = vld [vmem:[%s3198_s3 + $0x48] sm:$0xff] }
  0x13   : > { %2154 = vmatpush3.msra.mxu0 %v292_v3  ;;  %2397 = vmatpush3.msra.mxu1 %v958_v10  ;;  %v953_v24 = vld [vmem:[%s3198_s3 + $0x40] sm:$0xff]  ;;  %v241_v25 = vld [vmem:[%s2744_s9 + $0x68] sm:$0xff]  ;;  %v952_v26 = vld [vmem:[%s3198_s3 + $0x38] sm:$0xff] }
  0x14   : > { %2156 = vmatmul.mubr.msk.f32.vlgmr.msra.gmra.mxu0 %vm303_vm0, %v229_v6  ;;  %2251 = vmatprep.subr.mxu0 %v960_v4  ;;  %v242_v27 = vld [vmem:[%s2744_s9 + $0x70] sm:$0xff]  ;;  %v243_v29 = vld [vmem:[%s2744_s9 + $0x78] sm:$0xff]  ;;  %v950_v30 = vld [vmem:[%s3198_s3 + $0x28] sm:$0xff] }
  0x15   : > { %2158 = vmatprep.mubr.msk.f32.mxu0 %vm303_vm0, %v230_v7  ;;  %2252 = vmatpush3.msra.mxu0 %v960_v4  ;;  %v951_v28 = vld [vmem:[%s3198_s3 + $0x30] sm:$0xff]  ;;  %v244_v31 = vld [vmem:[%s2744_s9 + $0x80] sm:$0xff]  ;;  %v245_v33 = vld [vmem:[%s2744_s9 + $0x88] sm:$0xff] }
  0x16   : > { %2253 = vmatprep.subr.mxu0 %v959_v8  ;;  %2382 = vmatprep.subr.mxu1 %v957_v12  ;;  %v949_v32 = vld [vmem:[%s3198_s3 + $0x20] sm:$0xff]  ;;  %v246_v34 = vld [vmem:[%s2744_s9 + $0x90] sm:$0xff]  ;;  %v247_v35 = vld [vmem:[%s2744_s9 + $0x98] sm:$0xff] }
  0x17   : > { %2254 = vmatpush3.msra.mxu0 %v959_v8  ;;  %2398 = vmatpush3.msra.mxu1 %v957_v12  ;;  %v248_v36 = vld [vmem:[%s2744_s9 + $0xa0] sm:$0xff]  ;;  %v249_v37 = vld [vmem:[%s2744_s9 + $0xa8] sm:$0xff]  ;;  %v250_v38 = vld [vmem:[%s2744_s9 + $0xb0] sm:$0xff] }
  0x18   : > { %2159 = vmatmul.mubr.msk.f32.gmra.mxu0 %vm303_vm0, %v231_v9  ;;  %2255 = vmatprep.subr.mxu0 %v958_v10  ;;  %v251_v39 = vld [vmem:[%s2744_s9 + $0xb8] sm:$0xff]  ;;  %v252_v40 = vld [vmem:[%s2744_s9 + $0xc0] sm:$0xff]  ;;  %v253_v41 = vld [vmem:[%s2744_s9 + $0xc8] sm:$0xff] }
  0x19   : > { %2161 = vmatprep.mubr.msk.f32.mxu0 %vm303_vm0, %v232_v11  ;;  %2256 = vmatpush3.msra.mxu0 %v958_v10  ;;  %v254_v42 = vld [vmem:[%s2744_s9 + $0xd0] sm:$0xff]  ;;  %v255_v43 = vld [vmem:[%s2744_s9 + $0xd8] sm:$0xff]  ;;  %v256_v44 = vld [vmem:[%s2744_s9 + $0xe0] sm:$0xff] }
  0x1a   : > { %2257 = vmatprep.subr.mxu0 %v957_v12  ;;  %2383 = vmatprep.subr.mxu1 %v956_v14  ;;  %v257_v45 = vld [vmem:[%s2744_s9 + $0xe8] sm:$0xff]  ;;  %v258_v46 = vld [vmem:[%s2744_s9 + $0xf0] sm:$0xff]  ;;  %v259_v47 = vld [vmem:[%s2744_s9 + $0xf8] sm:$0xff] }
  0x1b   : > { %2258 = vmatpush3.msra.mxu0 %v957_v12  ;;  %2399 = vmatpush3.msra.mxu1 %v956_v14  ;;  %v260_v48 = vld [vmem:[%s2744_s9 + $0x100] sm:$0xff]  ;;  %v261_v49 = vld [vmem:[%s2744_s9 + $0x108] sm:$0xff]  ;;  %v262_v50 = vld [vmem:[%s2744_s9 + $0x110] sm:$0xff] }
  0x1c   : > { %2162 = vmatmul.mubr.msk.f32.gmra.mxu0 %vm303_vm0, %v233_v13  ;;  %2259 = vmatprep.subr.mxu0 %v956_v14  ;;  %v948_v51 = vld [vmem:[%s3198_s3 + $0x18] sm:$0xff]  ;;  %v947_v53 = vld [vmem:[%s3198_s3 + $0x10] sm:$0xff]  ;;  %v264_v54 = vld [vmem:[%s2744_s9 + $0x120] sm:$0xff] }
  0x1d   : > { %2164 = vmatprep.mubr.msk.f32.mxu0 %vm303_vm0, %v234_v15  ;;  %2260 = vmatpush3.msra.mxu0 %v956_v14  ;;  %v263_v52 = vld [vmem:[%s2744_s9 + $0x118] sm:$0xff]  ;;  %v946_v55 = vld [vmem:[%s3198_s3 + $0x8] sm:$0xff]  ;;  %v945_v57 = vld [vmem:[%s3198_s3] sm:$0xff] }
  0x1e   : > { %2261 = vmatprep.subr.mxu0 %v955_v16  ;;  %2384 = vmatprep.subr.mxu1 %v955_v16  ;;  %v265_v56 = vld [vmem:[%s2744_s9 + $0x128] sm:$0xff]  ;;  %v266_v58 = vld [vmem:[%s2744_s9 + $0x130] sm:$0xff]  ;;  %v267_v59 = vld [vmem:[%s2744_s9 + $0x138] sm:$0xff] }
  0x1f   : > { %2262 = vmatpush3.msra.mxu0 %v955_v16  ;;  %2400 = vmatpush3.msra.mxu1 %v955_v16  ;;  %v268_v60 = vld [vmem:[%s2744_s9 + $0x140] sm:$0xff]  ;;  %v269_v61 = vld [vmem:[%s2744_s9 + $0x148] sm:$0xff]  ;;  %v270_v62 = vld [vmem:[%s2744_s9 + $0x150] sm:$0xff] }
  0x20   : > { %2165 = vmatmul.mubr.msk.f32.gmra.mxu0 %vm303_vm0, %v235_v17  ;;  %2263 = vmatprep.subr.mxu0 %v954_v23  ;;  %v271_v63 = vld [vmem:[%s2744_s9 + $0x158] sm:$0xff]  ;;  %v272_v0 = vld [vmem:[%s2744_s9 + $0x160] sm:$0xff]  ;;  %v273_v1 = vld [vmem:[%s2744_s9 + $0x168] sm:$0xff] }
  0x21   : > { %2167 = vmatprep.mubr.msk.f32.mxu0 %vm303_vm0, %v236_v18  ;;  %2264 = vmatpush3.msra.mxu0 %v954_v23  ;;  %v274_v2 = vld [vmem:[%s2744_s9 + $0x170] sm:$0xff]  ;;  %v275_v3 = vld [vmem:[%s2744_s9 + $0x178] sm:$0xff]  ;;  %v276_v4 = vld [vmem:[%s2744_s9 + $0x180] sm:$0xff] }
  0x22   : > { %2265 = vmatprep.subr.mxu0 %v953_v24  ;;  %2385 = vmatprep.subr.mxu1 %v954_v23  ;;  %v277_v5 = vld [vmem:[%s2744_s9 + $0x188] sm:$0xff]  ;;  %v278_v6 = vld [vmem:[%s2744_s9 + $0x190] sm:$0xff]  ;;  %v279_v7 = vld [vmem:[%s2744_s9 + $0x198] sm:$0xff] }
  0x23   : > { %2266 = vmatpush3.msra.mxu0 %v953_v24  ;;  %2401 = vmatpush3.msra.mxu1 %v954_v23  ;;  %v280_v8 = vld [vmem:[%s2744_s9 + $0x1a0] sm:$0xff]  ;;  %v281_v9 = vld [vmem:[%s2744_s9 + $0x1a8] sm:$0xff]  ;;  %v282_v10 = vld [vmem:[%s2744_s9 + $0x1b0] sm:$0xff] }
  0x24   : > { %2168 = vmatmul.mubr.msk.f32.gmra.mxu0 %vm303_vm0, %v237_v19  ;;  %2267 = vmatprep.subr.mxu0 %v952_v26  ;;  %v283_v11 = vld [vmem:[%s2744_s9 + $0x1b8] sm:$0xff]  ;;  %v284_v12 = vld [vmem:[%s2744_s9 + $0x1c0] sm:$0xff]  ;;  %v285_v13 = vld [vmem:[%s2744_s9 + $0x1c8] sm:$0xff] }
  0x25   : > { %2170 = vmatprep.mubr.msk.f32.mxu0 %vm303_vm0, %v238_v20  ;;  %2268 = vmatpush3.msra.mxu0 %v952_v26  ;;  %v286_v14 = vld [vmem:[%s2744_s9 + $0x1d0] sm:$0xff]  ;;  %v287_v15 = vld [vmem:[%s2744_s9 + $0x1d8] sm:$0xff]  ;;  %v288_v16 = vld [vmem:[%s2744_s9 + $0x1e0] sm:$0xff] }
  0x26   : > { %2269 = vmatprep.subr.mxu0 %v951_v28  ;;  %2386 = vmatprep.subr.mxu1 %v953_v24  ;;  %v289_v17 = vld [vmem:[%s2744_s9 + $0x1e8] sm:$0xff]  ;;  %v290_v18 = vld [vmem:[%s2744_s9 + $0x1f0] sm:$0xff]  ;;  %v291_v19 = vld [vmem:[%s2744_s9 + $0x1f8] sm:$0xff] }
  0x27   : > { %2270 = vmatpush3.msra.mxu0 %v951_v28  ;;  %2402 = vmatpush3.msra.mxu1 %v953_v24  ;;  %v2922_v20 = vld [vmem:[%s3197_s2] ss:$0 sm:$0xff] }
  0x28   : > { %2171 = vmatmul.mubr.msk.f32.gmra.mxu0 %vm303_vm0, %v239_v21  ;;  %2271 = vmatprep.subr.mxu0 %v950_v30 }
  0x29   : > { %2173 = vmatprep.mubr.msk.f32.mxu0 %vm303_vm0, %v240_v22  ;;  %2272 = vmatpush3.msra.mxu0 %v950_v30 }
  0x2a   : > { %2273 = vmatprep.subr.mxu0 %v949_v32  ;;  %2387 = vmatprep.subr.mxu1 %v952_v26 }
  0x2b   : > { %2274 = vmatpush3.msra.mxu0 %v949_v32  ;;  %2403 = vmatpush3.msra.mxu1 %v952_v26 }
  0x2c   : > { %2174 = vmatmul.mubr.msk.f32.gmra.mxu0 %vm303_vm0, %v241_v25  ;;  %2388 = vmatprep.subr.mxu1 %v951_v28 }
  0x2d   : > { %2176 = vmatprep.mubr.msk.f32.mxu0 %vm303_vm0, %v242_v27  ;;  %2404 = vmatpush3.msra.mxu1 %v951_v28 }
  0x2e   : > { %2389 = vmatprep.subr.mxu1 %v950_v30  ;;  %2275 = vmatprep.subr.mxu0 %v948_v51 }
  0x2f   : > { %2405 = vmatpush3.msra.mxu1 %v950_v30  ;;  %2276 = vmatpush3.msra.mxu0 %v948_v51 }
  0x30   : > { %2177 = vmatmul.mubr.msk.f32.gmra.mxu0 %vm303_vm0, %v243_v29  ;;  %2390 = vmatprep.subr.mxu1 %v949_v32 }
  0x31   : > { %2179 = vmatprep.mubr.msk.f32.mxu0 %vm303_vm0, %v244_v31  ;;  %2406 = vmatpush3.msra.mxu1 %v949_v32 }
  0x32   : > { %2277 = vmatprep.subr.mxu0 %v947_v53  ;;  %2391 = vmatprep.subr.mxu1 %v948_v51 }
  0x33   : > { %2278 = vmatpush3.msra.mxu0 %v947_v53  ;;  %2407 = vmatpush3.msra.mxu1 %v948_v51 }
  0x34   : > { %2180 = vmatmul.mubr.msk.f32.gmra.mxu0 %vm303_vm0, %v245_v33  ;;  %2279 = vmatprep.subr.mxu0 %v946_v55 }
  0x35   : > { %2182 = vmatprep.mubr.msk.f32.mxu0 %vm303_vm0, %v246_v34  ;;  %2280 = vmatpush3.msra.mxu0 %v946_v55 }
  0x36   : > { %2281 = vmatprep.subr.mxu0 %v945_v57  ;;  %2392 = vmatprep.subr.mxu1 %v947_v53 }
  0x37   : > { %2282 = vmatpush3.msra.mxu0 %v945_v57  ;;  %2408 = vmatpush3.msra.mxu1 %v947_v53 }
  0x38   : > { %2183 = vmatmul.mubr.msk.f32.gmra.mxu0 %vm303_vm0, %v247_v35  ;;  %2393 = vmatprep.subr.mxu1 %v946_v55 }
  0x39   : > { %2185 = vmatprep.mubr.msk.f32.mxu0 %vm303_vm0, %v248_v36  ;;  %2409 = vmatpush3.msra.mxu1 %v946_v55 }
  0x3a   : > { %2394 = vmatprep.subr.mxu1 %v945_v57 }
  0x3b   : > { %2410 = vmatpush3.msra.mxu1 %v945_v57 }
  0x3c   : > { %2186 = vmatmul.mubr.msk.f32.gmra.mxu0 %vm303_vm0, %v249_v37 }
  0x3d   : > { %2188 = vmatprep.mubr.msk.f32.mxu0 %vm303_vm0, %v250_v38 }
  0x40   : > { %2189 = vmatmul.mubr.msk.f32.gmra.mxu0 %vm303_vm0, %v251_v39 }
  0x41   : > { %2191 = vmatprep.mubr.msk.f32.mxu0 %vm303_vm0, %v252_v40 }
  0x44   : > { %2192 = vmatmul.mubr.msk.f32.gmra.mxu0 %vm303_vm0, %v253_v41 }
  0x45   : > { %2194 = vmatprep.mubr.msk.f32.mxu0 %vm303_vm0, %v254_v42 }
  0x48   : > { %2195 = vmatmul.mubr.msk.f32.gmra.mxu0 %vm303_vm0, %v255_v43 }
  0x49   : > { %2197 = vmatprep.mubr.msk.f32.mxu0 %vm303_vm0, %v256_v44 }
  0x4c   : > { %2198 = vmatmul.mubr.msk.f32.gmra.mxu0 %vm303_vm0, %v257_v45 }
  0x4d   : > { %2200 = vmatprep.mubr.msk.f32.mxu0 %vm303_vm0, %v258_v46 }
  0x50   : > { %2201 = vmatmul.mubr.msk.f32.gmra.mxu0 %vm303_vm0, %v259_v47 }
  0x51   : > { %2203 = vmatprep.mubr.msk.f32.mxu0 %vm303_vm0, %v260_v48 }
  0x54   : > { %2204 = vmatmul.mubr.msk.f32.gmra.mxu0 %vm303_vm0, %v261_v49 }
  0x55   : > { %2206 = vmatprep.mubr.msk.f32.mxu0 %vm303_vm0, %v262_v50 }
  0x58   : > { %2207 = vmatmul.mubr.msk.f32.gmra.mxu0 %vm303_vm0, %v263_v52 }
  0x59   : > { %2209 = vmatprep.mubr.msk.f32.mxu0 %vm303_vm0, %v264_v54 }
  0x5c   : > { %2210 = vmatmul.mubr.msk.f32.gmra.mxu0 %vm303_vm0, %v265_v56 }
  0x5d   : > { %2212 = vmatprep.mubr.msk.f32.mxu0 %vm303_vm0, %v266_v58 }
  0x60   : > { %2213 = vmatmul.mubr.msk.f32.gmra.mxu0 %vm303_vm0, %v267_v59 }
  0x61   : > { %2215 = vmatprep.mubr.msk.f32.mxu0 %vm303_vm0, %v268_v60 }
  0x64   : > { %2216 = vmatmul.mubr.msk.f32.gmra.mxu0 %vm303_vm0, %v269_v61 }
  0x65   : > { %2218 = vmatprep.mubr.msk.f32.mxu0 %vm303_vm0, %v270_v62 }
  0x68   : > { %2219 = vmatmul.mubr.msk.f32.gmra.mxu0 %vm303_vm0, %v271_v63 }
  0x69   : > { %2221 = vmatprep.mubr.msk.f32.mxu0 %vm303_vm0, %v272_v0 }
  0x6c   : > { %2222 = vmatmul.mubr.msk.f32.gmra.mxu0 %vm303_vm0, %v273_v1 }
  0x6d   : > { %2224 = vmatprep.mubr.msk.f32.mxu0 %vm303_vm0, %v274_v2 }
  0x70   : > { %2225 = vmatmul.mubr.msk.f32.gmra.mxu0 %vm303_vm0, %v275_v3 }
  0x71   : > { %2227 = vmatprep.mubr.msk.f32.mxu0 %vm303_vm0, %v276_v4 }
  0x74   : > { %2228 = vmatmul.mubr.msk.f32.gmra.mxu0 %vm303_vm0, %v277_v5 }
  0x75   : > { %2230 = vmatprep.mubr.msk.f32.mxu0 %vm303_vm0, %v278_v6 }
  0x78   : > { %2231 = vmatmul.mubr.msk.f32.gmra.mxu0 %vm303_vm0, %v279_v7 }
  0x79   : > { %2233 = vmatprep.mubr.msk.f32.mxu0 %vm303_vm0, %v280_v8 }
  0x7c   : > { %2234 = vmatmul.mubr.msk.f32.gmra.mxu0 %vm303_vm0, %v281_v9 }
  0x7d   : > { %2236 = vmatprep.mubr.msk.f32.mxu0 %vm303_vm0, %v282_v10 }
  0x80   : > { %2237 = vmatmul.mubr.msk.f32.gmra.mxu0 %vm303_vm0, %v283_v11 }
  0x81   : > { %2239 = vmatprep.mubr.msk.f32.mxu0 %vm303_vm0, %v284_v12 }
  0x84   : > { %2240 = vmatmul.mubr.msk.f32.gmra.mxu0 %vm303_vm0, %v285_v13 }
  0x85   : > { %2242 = vmatprep.mubr.msk.f32.mxu0 %vm303_vm0, %v286_v14 }
  0x88   : > { %2243 = vmatmul.mubr.msk.f32.gmra.mxu0 %vm303_vm0, %v287_v15 }
  0x89   : > { %2245 = vmatprep.mubr.msk.f32.mxu0 %vm303_vm0, %v288_v16 }
  0x8c   : > { %2246 = vmatmul.mubr.msk.f32.gmra.mxu0 %vm303_vm0, %v289_v17 }
  0x8d   : > { %2248 = vmatprep.mubr.msk.f32.mxu0 %vm303_vm0, %v290_v18 }
  0x90   : > { %2249 = vmatmul.mubr.msk.f32.gmra.mxu0 %vm303_vm0, %v291_v19 }
  0xd4   : > { %v2157_v21 = vpop.f32.mrf.mxu0 }
  0xd5   : > { %v568_v22 = vadd.f32 %v2157_v21, %v2922_v20 }
  0xd6   : > { %v562_v23 = vpop.f32.mrf.mxu0 }
  0xd7   : > { %v563_v24 = vadd.f32 %v2922_v20, %v562_v23  ;;  %v882_v27 = vmax.f32 %v568_v22, 0.0 }
  0xd8   : > { %v2160_v25 = vpop.f32.mrf.mxu0 }
  0xd9   : > { %v881_v26 = vmax.f32 %v563_v24, 0.0  ;;  %v578_v28 = vadd.f32 %v2160_v25, %v2922_v20 }
  0xda   : > { %v572_v29 = vpop.f32.mrf.mxu0 }
  0xdb   : > { %v573_v30 = vadd.f32 %v2922_v20, %v572_v29  ;;  %2283 = vmatprep.mubr.f32.mxu0 %v881_v26  ;;  %v884_v33 = vmax.f32 %v578_v28, 0.0 }
  0xdc   : > { %v2163_v31 = vpop.f32.mrf.mxu0  ;;  %2284 = vmatmul.mubr.f32.vlgmr.msra.gmra.mxu0 %v882_v27 }
  0xdd   : > { %v883_v32 = vmax.f32 %v573_v30, 0.0  ;;  %v588_v34 = vadd.f32 %v2163_v31, %v2922_v20 }
  0xde   : > { %v582_v35 = vpop.f32.mrf.mxu0 }
  0xdf   : > { %v583_v36 = vadd.f32 %v2922_v20, %v582_v35  ;;  %2286 = vmatprep.mubr.f32.mxu0 %v883_v32  ;;  %v886_v39 = vmax.f32 %v588_v34, 0.0 }
  0xe0   : > { %v2166_v37 = vpop.f32.mrf.mxu0  ;;  %2287 = vmatmul.mubr.f32.gmra.mxu0 %v884_v33 }
  0xe1   : > { %v885_v38 = vmax.f32 %v583_v36, 0.0  ;;  %v598_v40 = vadd.f32 %v2166_v37, %v2922_v20 }
  0xe2   : > { %v592_v41 = vpop.f32.mrf.mxu0 }
  0xe3   : > { %2289 = vmatprep.mubr.f32.mxu0 %v885_v38  ;;  %v593_v42 = vadd.f32 %v2922_v20, %v592_v41  ;;  %v888_v45 = vmax.f32 %v598_v40, 0.0 }
  0xe4   : > { %v2169_v43 = vpop.f32.mrf.mxu0  ;;  %2290 = vmatmul.mubr.f32.gmra.mxu0 %v886_v39 }
  0xe5   : > { %v887_v44 = vmax.f32 %v593_v42, 0.0  ;;  %v608_v46 = vadd.f32 %v2169_v43, %v2922_v20 }
  0xe6   : > { %v602_v47 = vpop.f32.mrf.mxu0 }
  0xe7   : > { %v603_v48 = vadd.f32 %v2922_v20, %v602_v47  ;;  %2292 = vmatprep.mubr.f32.mxu1 %v887_v44  ;;  %v890_v51 = vmax.f32 %v608_v46, 0.0 }
  0xe8   : > { %v2172_v49 = vpop.f32.mrf.mxu0  ;;  %2293 = vmatmul.mubr.f32.vlgmr.msra.gmra.mxu1 %v888_v45 }
  0xe9   : > { %v889_v50 = vmax.f32 %v603_v48, 0.0  ;;  %v618_v52 = vadd.f32 %v2172_v49, %v2922_v20 }
  0xea   : > { %v612_v53 = vpop.f32.mrf.mxu0 }
  0xeb   : > { %v613_v54 = vadd.f32 %v2922_v20, %v612_v53  ;;  %2295 = vmatprep.mubr.f32.mxu1 %v889_v50  ;;  %v892_v57 = vmax.f32 %v618_v52, 0.0 }
  0xec   : > { %v2175_v55 = vpop.f32.mrf.mxu0  ;;  %2296 = vmatmul.mubr.f32.gmra.mxu1 %v890_v51 }
  0xed   : > { %v891_v56 = vmax.f32 %v613_v54, 0.0  ;;  %v628_v58 = vadd.f32 %v2175_v55, %v2922_v20 }
  0xee   : > { %v622_v59 = vpop.f32.mrf.mxu0 }
  0xef   : > { %v623_v60 = vadd.f32 %v2922_v20, %v622_v59  ;;  %2298 = vmatprep.mubr.f32.mxu1 %v891_v56  ;;  %v894_v63 = vmax.f32 %v628_v58, 0.0 }
  0xf0   : > { %v2178_v61 = vpop.f32.mrf.mxu0  ;;  %2299 = vmatmul.mubr.f32.gmra.mxu1 %v892_v57 }
  0xf1   : > { %v893_v62 = vmax.f32 %v623_v60, 0.0  ;;  %v638_v0 = vadd.f32 %v2178_v61, %v2922_v20 }
  0xf2   : > { %v632_v1 = vpop.f32.mrf.mxu0 }
  0xf3   : > { %v633_v2 = vadd.f32 %v2922_v20, %v632_v1  ;;  %2301 = vmatprep.mubr.f32.mxu1 %v893_v62  ;;  %v896_v5 = vmax.f32 %v638_v0, 0.0 }
  0xf4   : > { %v2181_v3 = vpop.f32.mrf.mxu0  ;;  %2302 = vmatmul.mubr.f32.gmra.mxu1 %v894_v63 }
  0xf5   : > { %v895_v4 = vmax.f32 %v633_v2, 0.0  ;;  %v648_v6 = vadd.f32 %v2181_v3, %v2922_v20 }
  0xf6   : > { %v642_v7 = vpop.f32.mrf.mxu0 }
  0xf7   : > { %v643_v8 = vadd.f32 %v2922_v20, %v642_v7  ;;  %2304 = vmatprep.mubr.f32.mxu1 %v895_v4  ;;  %v898_v11 = vmax.f32 %v648_v6, 0.0 }
  0xf8   : > { %v2184_v9 = vpop.f32.mrf.mxu0  ;;  %2305 = vmatmul.mubr.f32.gmra.mxu1 %v896_v5 }
  0xf9   : > { %v897_v10 = vmax.f32 %v643_v8, 0.0  ;;  %v658_v12 = vadd.f32 %v2184_v9, %v2922_v20 }
  0xfa   : > { %v652_v13 = vpop.f32.mrf.mxu0 }
  0xfb   : > { %v653_v14 = vadd.f32 %v2922_v20, %v652_v13  ;;  %2307 = vmatprep.mubr.f32.mxu1 %v897_v10  ;;  %v900_v17 = vmax.f32 %v658_v12, 0.0 }
  0xfc   : > { %v2187_v15 = vpop.f32.mrf.mxu0  ;;  %2308 = vmatmul.mubr.f32.gmra.mxu1 %v898_v11 }
  0xfd   : > { %v899_v16 = vmax.f32 %v653_v14, 0.0  ;;  %v668_v18 = vadd.f32 %v2187_v15, %v2922_v20 }
  0xfe   : > { %v662_v19 = vpop.f32.mrf.mxu0 }
  0xff   : > { %v663_v21 = vadd.f32 %v2922_v20, %v662_v19  ;;  %2310 = vmatprep.mubr.f32.mxu1 %v899_v16  ;;  %v902_v24 = vmax.f32 %v668_v18, 0.0 }
 0x100   : > { %v2190_v22 = vpop.f32.mrf.mxu0  ;;  %2311 = vmatmul.mubr.f32.gmra.mxu1 %v900_v17 }
 0x101   : > { %v901_v23 = vmax.f32 %v663_v21, 0.0  ;;  %v678_v25 = vadd.f32 %v2190_v22, %v2922_v20 }
 0x102   : > { %v672_v26 = vpop.f32.mrf.mxu0 }
 0x103   : > { %v673_v27 = vadd.f32 %v2922_v20, %v672_v26  ;;  %2313 = vmatprep.mubr.f32.mxu1 %v901_v23  ;;  %v904_v30 = vmax.f32 %v678_v25, 0.0 }
 0x104   : > { %v2193_v28 = vpop.f32.mrf.mxu0  ;;  %2314 = vmatmul.mubr.f32.gmra.mxu1 %v902_v24 }
 0x105   : > { %v903_v29 = vmax.f32 %v673_v27, 0.0  ;;  %v688_v31 = vadd.f32 %v2193_v28, %v2922_v20 }
 0x106   : > { %v682_v32 = vpop.f32.mrf.mxu0 }
 0x107   : > { %v683_v33 = vadd.f32 %v2922_v20, %v682_v32  ;;  %2316 = vmatprep.mubr.f32.mxu1 %v903_v29  ;;  %v906_v36 = vmax.f32 %v688_v31, 0.0 }
 0x108   : > { %v2196_v34 = vpop.f32.mrf.mxu0  ;;  %2317 = vmatmul.mubr.f32.gmra.mxu1 %v904_v30 }
 0x109   : > { %v905_v35 = vmax.f32 %v683_v33, 0.0  ;;  %v698_v37 = vadd.f32 %v2196_v34, %v2922_v20 }
 0x10a   : > { %v692_v38 = vpop.f32.mrf.mxu0 }
 0x10b   : > { %v693_v39 = vadd.f32 %v2922_v20, %v692_v38  ;;  %2319 = vmatprep.mubr.f32.mxu1 %v905_v35  ;;  %v908_v42 = vmax.f32 %v698_v37, 0.0 }
 0x10c   : > { %v2199_v40 = vpop.f32.mrf.mxu0  ;;  %2320 = vmatmul.mubr.f32.gmra.mxu1 %v906_v36 }
 0x10d   : > { %v907_v41 = vmax.f32 %v693_v39, 0.0  ;;  %v708_v43 = vadd.f32 %v2199_v40, %v2922_v20 }
 0x10e   : > { %v702_v44 = vpop.f32.mrf.mxu0 }
 0x10f   : > { %v703_v45 = vadd.f32 %v2922_v20, %v702_v44  ;;  %2322 = vmatprep.mubr.f32.mxu1 %v907_v41  ;;  %v910_v48 = vmax.f32 %v708_v43, 0.0 }
 0x110   : > { %v2202_v46 = vpop.f32.mrf.mxu0  ;;  %2323 = vmatmul.mubr.f32.gmra.mxu1 %v908_v42 }
 0x111   : > { %v909_v47 = vmax.f32 %v703_v45, 0.0  ;;  %v718_v49 = vadd.f32 %v2202_v46, %v2922_v20 }
 0x112   : > { %v712_v50 = vpop.f32.mrf.mxu0 }
 0x113   : > { %v713_v51 = vadd.f32 %v2922_v20, %v712_v50  ;;  %2325 = vmatprep.mubr.f32.mxu1 %v909_v47  ;;  %v912_v54 = vmax.f32 %v718_v49, 0.0 }
 0x114   : > { %v2205_v52 = vpop.f32.mrf.mxu0  ;;  %2326 = vmatmul.mubr.f32.gmra.mxu1 %v910_v48 }
 0x115   : > { %v911_v53 = vmax.f32 %v713_v51, 0.0  ;;  %v728_v55 = vadd.f32 %v2205_v52, %v2922_v20 }
 0x116   : > { %v722_v56 = vpop.f32.mrf.mxu0 }
 0x117   : > { %v723_v57 = vadd.f32 %v2922_v20, %v722_v56  ;;  %2328 = vmatprep.mubr.f32.mxu1 %v911_v53  ;;  %v914_v60 = vmax.f32 %v728_v55, 0.0 }
 0x118   : > { %v2208_v58 = vpop.f32.mrf.mxu0  ;;  %2329 = vmatmul.mubr.f32.gmra.mxu1 %v912_v54 }
 0x119   : > { %v913_v59 = vmax.f32 %v723_v57, 0.0  ;;  %v738_v61 = vadd.f32 %v2208_v58, %v2922_v20 }
 0x11a   : > { %v732_v62 = vpop.f32.mrf.mxu0 }
 0x11b   : > { %v733_v63 = vadd.f32 %v2922_v20, %v732_v62  ;;  %2331 = vmatprep.mubr.f32.mxu1 %v913_v59  ;;  %v916_v2 = vmax.f32 %v738_v61, 0.0 }
 0x11c   : > { %v2211_v0 = vpop.f32.mrf.mxu0  ;;  %2332 = vmatmul.mubr.f32.gmra.mxu1 %v914_v60 }
 0x11d   : > { %v915_v1 = vmax.f32 %v733_v63, 0.0  ;;  %v748_v3 = vadd.f32 %v2211_v0, %v2922_v20 }
 0x11e   : > { %v742_v4 = vpop.f32.mrf.mxu0 }
 0x11f   : > { %v743_v5 = vadd.f32 %v2922_v20, %v742_v4  ;;  %2334 = vmatprep.mubr.f32.mxu1 %v915_v1  ;;  %v918_v8 = vmax.f32 %v748_v3, 0.0 }
 0x120   : > { %v2214_v6 = vpop.f32.mrf.mxu0  ;;  %2335 = vmatmul.mubr.f32.gmra.mxu1 %v916_v2 }
 0x121   : > { %v917_v7 = vmax.f32 %v743_v5, 0.0  ;;  %v758_v9 = vadd.f32 %v2214_v6, %v2922_v20 }
 0x122   : > { %v752_v10 = vpop.f32.mrf.mxu0 }
 0x123   : > { %v753_v11 = vadd.f32 %v2922_v20, %v752_v10  ;;  %2337 = vmatprep.mubr.f32.mxu1 %v917_v7  ;;  %v920_v14 = vmax.f32 %v758_v9, 0.0 }
 0x124   : > { %v2217_v12 = vpop.f32.mrf.mxu0  ;;  %2338 = vmatmul.mubr.f32.gmra.mxu1 %v918_v8 }
 0x125   : > { %v919_v13 = vmax.f32 %v753_v11, 0.0  ;;  %v768_v15 = vadd.f32 %v2217_v12, %v2922_v20 }
 0x126   : > { %v762_v16 = vpop.f32.mrf.mxu0 }
 0x127   : > { %v763_v17 = vadd.f32 %v2922_v20, %v762_v16  ;;  %2340 = vmatprep.mubr.f32.mxu1 %v919_v13  ;;  %v922_v21 = vmax.f32 %v768_v15, 0.0 }
 0x128   : > { %v2220_v18 = vpop.f32.mrf.mxu0  ;;  %2341 = vmatmul.mubr.f32.gmra.mxu1 %v920_v14 }
 0x129   : > { %v921_v19 = vmax.f32 %v763_v17, 0.0  ;;  %v778_v22 = vadd.f32 %v2220_v18, %v2922_v20 }
 0x12a   : > { %v772_v23 = vpop.f32.mrf.mxu0 }
 0x12b   : > { %v773_v24 = vadd.f32 %v2922_v20, %v772_v23  ;;  %2343 = vmatprep.mubr.f32.mxu1 %v921_v19  ;;  %v924_v27 = vmax.f32 %v778_v22, 0.0 }
 0x12c   : > { %v2223_v25 = vpop.f32.mrf.mxu0  ;;  %2344 = vmatmul.mubr.f32.gmra.mxu1 %v922_v21 }
 0x12d   : > { %v923_v26 = vmax.f32 %v773_v24, 0.0  ;;  %v788_v28 = vadd.f32 %v2223_v25, %v2922_v20  ;;  %v2991_v24 = vld [vmem:[%s3199_s4] ss:$0 sm:$0xff] }
 0x12e   : > { %v782_v29 = vpop.f32.mrf.mxu0 }
 0x12f   : > { %v783_v30 = vadd.f32 %v2922_v20, %v782_v29  ;;  %2346 = vmatprep.mubr.f32.mxu1 %v923_v26  ;;  %v926_v33 = vmax.f32 %v788_v28, 0.0 }
 0x130   : > { %v2226_v31 = vpop.f32.mrf.mxu0  ;;  %2347 = vmatmul.mubr.f32.gmra.mxu1 %v924_v27 }
 0x131   : > { %v925_v32 = vmax.f32 %v783_v30, 0.0  ;;  %v798_v34 = vadd.f32 %v2226_v31, %v2922_v20 }
 0x132   : > { %v792_v35 = vpop.f32.mrf.mxu0 }
 0x133   : > { %v793_v36 = vadd.f32 %v2922_v20, %v792_v35  ;;  %2349 = vmatprep.mubr.f32.mxu1 %v925_v32  ;;  %v928_v39 = vmax.f32 %v798_v34, 0.0 }
 0x134   : > { %v2229_v37 = vpop.f32.mrf.mxu0  ;;  %2350 = vmatmul.mubr.f32.gmra.mxu1 %v926_v33 }
 0x135   : > { %v927_v38 = vmax.f32 %v793_v36, 0.0  ;;  %v808_v40 = vadd.f32 %v2229_v37, %v2922_v20 }
 0x136   : > { %v802_v41 = vpop.f32.mrf.mxu0 }
 0x137   : > { %v803_v42 = vadd.f32 %v2922_v20, %v802_v41  ;;  %2352 = vmatprep.mubr.f32.mxu1 %v927_v38  ;;  %v930_v45 = vmax.f32 %v808_v40, 0.0 }
 0x138   : > { %v2232_v43 = vpop.f32.mrf.mxu0  ;;  %2353 = vmatmul.mubr.f32.gmra.mxu1 %v928_v39 }
 0x139   : > { %v929_v44 = vmax.f32 %v803_v42, 0.0  ;;  %v818_v46 = vadd.f32 %v2232_v43, %v2922_v20 }
 0x13a   : > { %v812_v47 = vpop.f32.mrf.mxu0 }
 0x13b   : > { %v813_v48 = vadd.f32 %v2922_v20, %v812_v47  ;;  %2355 = vmatprep.mubr.f32.mxu1 %v929_v44  ;;  %v932_v51 = vmax.f32 %v818_v46, 0.0 }
 0x13c   : > { %v2235_v49 = vpop.f32.mrf.mxu0  ;;  %2356 = vmatmul.mubr.f32.gmra.mxu1 %v930_v45 }
 0x13d   : > { %v931_v50 = vmax.f32 %v813_v48, 0.0  ;;  %v828_v52 = vadd.f32 %v2235_v49, %v2922_v20 }
 0x13e   : > { %v822_v53 = vpop.f32.mrf.mxu0 }
 0x13f   : > { %v823_v54 = vadd.f32 %v2922_v20, %v822_v53  ;;  %2358 = vmatprep.mubr.f32.mxu1 %v931_v50  ;;  %v934_v57 = vmax.f32 %v828_v52, 0.0 }
 0x140   : > { %v2238_v55 = vpop.f32.mrf.mxu0  ;;  %2359 = vmatmul.mubr.f32.gmra.mxu1 %v932_v51 }
 0x141   : > { %v933_v56 = vmax.f32 %v823_v54, 0.0  ;;  %v838_v58 = vadd.f32 %v2238_v55, %v2922_v20 }
 0x142   : > { %v832_v59 = vpop.f32.mrf.mxu0 }
 0x143   : > { %v833_v60 = vadd.f32 %v2922_v20, %v832_v59  ;;  %2361 = vmatprep.mubr.f32.mxu1 %v933_v56  ;;  %v936_v63 = vmax.f32 %v838_v58, 0.0 }
 0x144   : > { %v2241_v61 = vpop.f32.mrf.mxu0  ;;  %2362 = vmatmul.mubr.f32.gmra.mxu1 %v934_v57 }
 0x145   : > { %v935_v62 = vmax.f32 %v833_v60, 0.0  ;;  %v848_v0 = vadd.f32 %v2241_v61, %v2922_v20 }
 0x146   : > { %v842_v1 = vpop.f32.mrf.mxu0 }
 0x147   : > { %v843_v2 = vadd.f32 %v2922_v20, %v842_v1  ;;  %2364 = vmatprep.mubr.f32.mxu1 %v935_v62  ;;  %v938_v5 = vmax.f32 %v848_v0, 0.0 }
 0x148   : > { %v2244_v3 = vpop.f32.mrf.mxu0  ;;  %2365 = vmatmul.mubr.f32.gmra.mxu1 %v936_v63 }
 0x149   : > { %v937_v4 = vmax.f32 %v843_v2, 0.0  ;;  %v858_v6 = vadd.f32 %v2244_v3, %v2922_v20 }
 0x14a   : > { %v852_v7 = vpop.f32.mrf.mxu0 }
 0x14b   : > { %v853_v8 = vadd.f32 %v2922_v20, %v852_v7  ;;  %2367 = vmatprep.mubr.f32.mxu1 %v937_v4  ;;  %v940_v11 = vmax.f32 %v858_v6, 0.0 }
 0x14c   : > { %v2247_v9 = vpop.f32.mrf.mxu0  ;;  %2368 = vmatmul.mubr.f32.gmra.mxu1 %v938_v5 }
 0x14d   : > { %v939_v10 = vmax.f32 %v853_v8, 0.0  ;;  %v868_v12 = vadd.f32 %v2247_v9, %v2922_v20 }
 0x14e   : > { %v862_v13 = vpop.f32.mrf.mxu0 }
 0x14f   : > { %v863_v14 = vadd.f32 %v2922_v20, %v862_v13  ;;  %2370 = vmatprep.mubr.f32.mxu1 %v939_v10  ;;  %v942_v17 = vmax.f32 %v868_v12, 0.0 }
 0x150   : > { %v2250_v15 = vpop.f32.mrf.mxu0  ;;  %2371 = vmatmul.mubr.f32.gmra.mxu1 %v940_v11 }
 0x151   : > { %v941_v16 = vmax.f32 %v863_v14, 0.0  ;;  %v878_v18 = vadd.f32 %v2250_v15, %v2922_v20 }
 0x152   : > { %v872_v19 = vpop.f32.mrf.mxu0 }
 0x153   : > { %v873_v21 = vadd.f32 %v2922_v20, %v872_v19  ;;  %2373 = vmatprep.mubr.f32.mxu1 %v941_v16  ;;  %v944_v23 = vmax.f32 %v878_v18, 0.0 }
 0x154   : > { %2374 = vmatmul.mubr.f32.gmra.mxu1 %v942_v17 }
 0x155   : > { %v943_v22 = vmax.f32 %v873_v21, 0.0 }
 0x157   : > { %2376 = vmatprep.mubr.f32.mxu1 %v943_v22 }
 0x158   : > { %2377 = vmatmul.mubr.f32.gmra.mxu1 %v944_v23 }
 0x19c   : > { %v2285_v25 = vpop.f32.mrf.mxu0 }
 0x19d   : > { %v1040_v26 = vadd.f32 %v2285_v25, %v2991_v24 }
 0x19e   : > { %v1034_v27 = vpop.f32.mrf.mxu0 }
 0x19f   : > { %v1934_v28 = vmul.f32 -1.442695, %v1040_v26  ;;  %v1035_v29 = vadd.f32 %v2991_v24, %v1034_v27 }
 0x1a0   : > { %v2288_v30 = vpop.f32.mrf.mxu0 }
 0x1a1   : > { %2419 = vpow2.f32 %v1934_v28  ;;  %v1933_v20 = vmul.f32 -1.442695, %v1035_v29  ;;  %v1050_v31 = vadd.f32 %v2288_v30, %v2991_v24 }
 0x1a2   : > { %v1044_v32 = vpop.f32.mrf.mxu0 }
 0x1a3   : > { %2421 = vpow2.f32 %v1933_v20  ;;  %v1936_v33 = vmul.f32 -1.442695, %v1050_v31  ;;  %v1045_v34 = vadd.f32 %v2991_v24, %v1044_v32 }
 0x1a4   : > { %v2291_v35 = vpop.f32.mrf.mxu0 }
 0x1a5   : > { %2423 = vpow2.f32 %v1936_v33  ;;  %v1935_v36 = vmul.f32 -1.442695, %v1045_v34  ;;  %v1060_v37 = vadd.f32 %v2291_v35, %v2991_v24 }
 0x1a6   : > { %v1054_v38 = vpop.f32.mrf.mxu0 }
 0x1a7   : > { %2425 = vpow2.f32 %v1935_v36  ;;  %v1938_v39 = vmul.f32 -1.442695, %v1060_v37  ;;  %v1055_v40 = vadd.f32 %v2991_v24, %v1054_v38 }
 0x1a8   : > { %v2294_v41 = vpop.f32.mrf.mxu1 }
 0x1a9   : > { %2427 = vpow2.f32 %v1938_v39  ;;  %v1937_v42 = vmul.f32 -1.442695, %v1055_v40  ;;  %v1070_v43 = vadd.f32 %v2294_v41, %v2991_v24 }
 0x1aa   : > { %v1064_v44 = vpop.f32.mrf.mxu1 }
 0x1ab   : > { %2429 = vpow2.f32 %v1937_v42  ;;  %v1940_v45 = vmul.f32 -1.442695, %v1070_v43  ;;  %v1065_v46 = vadd.f32 %v2991_v24, %v1064_v44 }
 0x1ac   : > { %v2297_v47 = vpop.f32.mrf.mxu1 }
 0x1ad   : > { %2431 = vpow2.f32 %v1940_v45  ;;  %v1939_v48 = vmul.f32 -1.442695, %v1065_v46  ;;  %v1080_v49 = vadd.f32 %v2297_v47, %v2991_v24 }
 0x1ae   : > { %v2420_v50 = vpop.eup %2419  ;;  %v1074_v51 = vpop.f32.mrf.mxu1 }
 0x1af   : > { %v1546_v52 = vadd.f32 1.0, %v2420_v50  ;;  %2433 = vpow2.f32 %v1939_v48  ;;  %v1942_v53 = vmul.f32 -1.442695, %v1080_v49  ;;  %v1075_v54 = vadd.f32 %v2991_v24, %v1074_v51 }
 0x1b0   : > { %v2422_v55 = vpop.eup %2421  ;;  %v2300_v56 = vpop.f32.mrf.mxu1 }
 0x1b1   : > { %2435 = vrcp.f32 %v1546_v52  ;;  %v1545_v57 = vadd.f32 1.0, %v2422_v55  ;;  %v1941_v58 = vmul.f32 -1.442695, %v1075_v54  ;;  %v1090_v59 = vadd.f32 %v2300_v56, %v2991_v24 }
 0x1b2   : > { %v2424_v60 = vpop.eup %2423  ;;  %2437 = vpow2.f32 %v1942_v53  ;;  %v1084_v61 = vpop.f32.mrf.mxu1 }
 0x1b3   : > { %2439 = vrcp.f32 %v1545_v57  ;;  %v1548_v62 = vadd.f32 1.0, %v2424_v60  ;;  %v1944_v63 = vmul.f32 -1.442695, %v1090_v59  ;;  %v1085_v0 = vadd.f32 %v2991_v24, %v1084_v61 }
 0x1b4   : > { %v2426_v1 = vpop.eup %2425  ;;  %2441 = vpow2.f32 %v1941_v58  ;;  %v2303_v2 = vpop.f32.mrf.mxu1 }
 0x1b5   : > { %2443 = vrcp.f32 %v1548_v62  ;;  %v1547_v3 = vadd.f32 1.0, %v2426_v1  ;;  %v1943_v4 = vmul.f32 -1.442695, %v1085_v0  ;;  %v1100_v5 = vadd.f32 %v2303_v2, %v2991_v24 }
 0x1b6   : > { %v2428_v6 = vpop.eup %2427  ;;  %2445 = vpow2.f32 %v1944_v63  ;;  %v1094_v7 = vpop.f32.mrf.mxu1 }
 0x1b7   : > { %2447 = vrcp.f32 %v1547_v3  ;;  %v1550_v8 = vadd.f32 1.0, %v2428_v6  ;;  %v1946_v9 = vmul.f32 -1.442695, %v1100_v5  ;;  %v1095_v10 = vadd.f32 %v2991_v24, %v1094_v7 }
 0x1b8   : > { %v2430_v11 = vpop.eup %2429  ;;  %2449 = vpow2.f32 %v1943_v4  ;;  %v2306_v12 = vpop.f32.mrf.mxu1 }
 0x1b9   : > { %2451 = vrcp.f32 %v1550_v8  ;;  %v1549_v13 = vadd.f32 1.0, %v2430_v11  ;;  %v1945_v14 = vmul.f32 -1.442695, %v1095_v10  ;;  %v1110_v15 = vadd.f32 %v2306_v12, %v2991_v24 }
 0x1ba   : > { %v2432_v16 = vpop.eup %2431  ;;  %2453 = vpow2.f32 %v1946_v9  ;;  %v1104_v17 = vpop.f32.mrf.mxu1 }
 0x1bb   : > { %2455 = vrcp.f32 %v1549_v13  ;;  %v1552_v18 = vadd.f32 1.0, %v2432_v16  ;;  %v1948_v19 = vmul.f32 -1.442695, %v1110_v15  ;;  %v1105_v21 = vadd.f32 %v2991_v24, %v1104_v17 }
 0x1bc   : > { %v2434_v22 = vpop.eup %2433  ;;  %2457 = vpow2.f32 %v1945_v14  ;;  %v2309_v23 = vpop.f32.mrf.mxu1 }
 0x1bd   : > { %2459 = vrcp.f32 %v1552_v18  ;;  %v1551_v25 = vadd.f32 1.0, %v2434_v22  ;;  %v1947_v26 = vmul.f32 -1.442695, %v1105_v21  ;;  %v1120_v27 = vadd.f32 %v2309_v23, %v2991_v24 }
 0x1be   : > { %v2436_v28 = vpop.eup %2435  ;;  %2461 = vpow2.f32 %v1948_v19  ;;  %v1114_v29 = vpop.f32.mrf.mxu1 }
 0x1bf   : > { %v2438_v30 = vpop.eup %2437  ;;  %1739 = vst.msk [vmem:[%s3014_s26 + $0x8] sm:$0xff] %vm1737_vm1, %v2436_v28  ;;  %2463 = vrcp.f32 %v1551_v25  ;;  %v1950_v20 = vmul.f32 -1.442695, %v1120_v27  ;;  %v1115_v31 = vadd.f32 %v2991_v24, %v1114_v29 }
 0x1c0   : > { %v2440_v32 = vpop.eup %2439  ;;  %v1554_v33 = vadd.f32 1.0, %v2438_v30  ;;  %2465 = vpow2.f32 %v1947_v26  ;;  %v2312_v34 = vpop.f32.mrf.mxu1 }
 0x1c1   : > { %v2442_v35 = vpop.eup %2441  ;;  %1738 = vst.msk [vmem:[%s3014_s26] sm:$0xff] %vm1737_vm1, %v2440_v32  ;;  %2467 = vpow2.f32 %v1950_v20  ;;  %v1949_v36 = vmul.f32 -1.442695, %v1115_v31  ;;  %v1130_v37 = vadd.f32 %v2312_v34, %v2991_v24 }
 0x1c2   : > { %v2444_v38 = vpop.eup %2443  ;;  %2469 = vrcp.f32 %v1554_v33  ;;  %v1553_v39 = vadd.f32 1.0, %v2442_v35  ;;  %v1124_v40 = vpop.f32.mrf.mxu1 }
 0x1c3   : > { %v2446_v41 = vpop.eup %2445  ;;  %1741 = vst.msk [vmem:[%s3014_s26 + $0x18] sm:$0xff] %vm1737_vm1, %v2444_v38  ;;  %2471 = vpow2.f32 %v1949_v36  ;;  %v1952_v42 = vmul.f32 -1.442695, %v1130_v37  ;;  %v1125_v43 = vadd.f32 %v2991_v24, %v1124_v40 }
 0x1c4   : > { %v2448_v44 = vpop.eup %2447  ;;  %2473 = vrcp.f32 %v1553_v39  ;;  %v1556_v45 = vadd.f32 1.0, %v2446_v41  ;;  %v2315_v46 = vpop.f32.mrf.mxu1 }
 0x1c5   : > { %v2450_v47 = vpop.eup %2449  ;;  %1740 = vst.msk [vmem:[%s3014_s26 + $0x10] sm:$0xff] %vm1737_vm1, %v2448_v44  ;;  %2475 = vpow2.f32 %v1952_v42  ;;  %v1951_v48 = vmul.f32 -1.442695, %v1125_v43  ;;  %v1140_v49 = vadd.f32 %v2315_v46, %v2991_v24 }
 0x1c6   : > { %v2452_v50 = vpop.eup %2451  ;;  %2477 = vrcp.f32 %v1556_v45  ;;  %v1555_v51 = vadd.f32 1.0, %v2450_v47  ;;  %v1134_v52 = vpop.f32.mrf.mxu1 }
 0x1c7   : > { %v2454_v53 = vpop.eup %2453  ;;  %1743 = vst.msk [vmem:[%s3014_s26 + $0x28] sm:$0xff] %vm1737_vm1, %v2452_v50  ;;  %2479 = vpow2.f32 %v1951_v48  ;;  %v1954_v54 = vmul.f32 -1.442695, %v1140_v49  ;;  %v1135_v55 = vadd.f32 %v2991_v24, %v1134_v52 }
 0x1c8   : > { %v2456_v56 = vpop.eup %2455  ;;  %2481 = vrcp.f32 %v1555_v51  ;;  %v1558_v57 = vadd.f32 1.0, %v2454_v53  ;;  %v2318_v58 = vpop.f32.mrf.mxu1 }
 0x1c9   : > { %v2458_v59 = vpop.eup %2457  ;;  %1742 = vst.msk [vmem:[%s3014_s26 + $0x20] sm:$0xff] %vm1737_vm1, %v2456_v56  ;;  %2483 = vpow2.f32 %v1954_v54  ;;  %v1953_v60 = vmul.f32 -1.442695, %v1135_v55  ;;  %v1150_v61 = vadd.f32 %v2318_v58, %v2991_v24 }
 0x1ca   : > { %v2460_v62 = vpop.eup %2459  ;;  %2485 = vrcp.f32 %v1558_v57  ;;  %v1557_v63 = vadd.f32 1.0, %v2458_v59  ;;  %v1144_v0 = vpop.f32.mrf.mxu1 }
 0x1cb   : > { %v2462_v1 = vpop.eup %2461  ;;  %1745 = vst.msk [vmem:[%s3014_s26 + $0x38] sm:$0xff] %vm1737_vm1, %v2460_v62  ;;  %2487 = vpow2.f32 %v1953_v60  ;;  %v1956_v2 = vmul.f32 -1.442695, %v1150_v61  ;;  %v1145_v3 = vadd.f32 %v2991_v24, %v1144_v0 }
 0x1cc   : > { %v2464_v4 = vpop.eup %2463  ;;  %2489 = vrcp.f32 %v1557_v63  ;;  %v1560_v5 = vadd.f32 1.0, %v2462_v1  ;;  %v2321_v6 = vpop.f32.mrf.mxu1 }
 0x1cd   : > { %v2466_v7 = vpop.eup %2465  ;;  %1744 = vst.msk [vmem:[%s3014_s26 + $0x30] sm:$0xff] %vm1737_vm1, %v2464_v4  ;;  %2491 = vpow2.f32 %v1956_v2  ;;  %v1955_v8 = vmul.f32 -1.442695, %v1145_v3  ;;  %v1160_v9 = vadd.f32 %v2321_v6, %v2991_v24 }
 0x1ce   : > { %v2468_v10 = vpop.eup %2467  ;;  %2493 = vrcp.f32 %v1560_v5  ;;  %v1559_v11 = vadd.f32 1.0, %v2466_v7  ;;  %v1154_v12 = vpop.f32.mrf.mxu1 }
 0x1cf   : > { %v2470_v13 = vpop.eup %2469  ;;  %v1562_v14 = vadd.f32 1.0, %v2468_v10  ;;  %2495 = vpow2.f32 %v1955_v8  ;;  %v1958_v15 = vmul.f32 -1.442695, %v1160_v9  ;;  %v1155_v16 = vadd.f32 %v2991_v24, %v1154_v12 }
 0x1d0   : > { %v2472_v17 = vpop.eup %2471  ;;  %1747 = vst.msk [vmem:[%s3014_s26 + $0x48] sm:$0xff] %vm1737_vm1, %v2470_v13  ;;  %2497 = vrcp.f32 %v1559_v11  ;;  %v2324_v18 = vpop.f32.mrf.mxu1 }
 0x1d1   : > { %v2474_v19 = vpop.eup %2473  ;;  %2499 = vrcp.f32 %v1562_v14  ;;  %v1561_v21 = vadd.f32 1.0, %v2472_v17  ;;  %v1957_v22 = vmul.f32 -1.442695, %v1155_v16  ;;  %v1170_v23 = vadd.f32 %v2324_v18, %v2991_v24 }
 0x1d2   : > { %v2476_v25 = vpop.eup %2475  ;;  %1746 = vst.msk [vmem:[%s3014_s26 + $0x40] sm:$0xff] %vm1737_vm1, %v2474_v19  ;;  %2501 = vpow2.f32 %v1958_v15  ;;  %v1164_v26 = vpop.f32.mrf.mxu1 }
 0x1d3   : > { %v2478_v27 = vpop.eup %2477  ;;  %2503 = vrcp.f32 %v1561_v21  ;;  %v1564_v28 = vadd.f32 1.0, %v2476_v25  ;;  %v1960_v29 = vmul.f32 -1.442695, %v1170_v23  ;;  %v1165_v30 = vadd.f32 %v2991_v24, %v1164_v26 }
 0x1d4   : > { %v2480_v20 = vpop.eup %2479  ;;  %1749 = vst.msk [vmem:[%s3014_s26 + $0x58] sm:$0xff] %vm1737_vm1, %v2478_v27  ;;  %2505 = vpow2.f32 %v1957_v22  ;;  %v2327_v31 = vpop.f32.mrf.mxu1 }
 0x1d5   : > { %v2482_v32 = vpop.eup %2481  ;;  %2507 = vrcp.f32 %v1564_v28  ;;  %v1563_v33 = vadd.f32 1.0, %v2480_v20  ;;  %v1959_v34 = vmul.f32 -1.442695, %v1165_v30  ;;  %v1180_v35 = vadd.f32 %v2327_v31, %v2991_v24 }
 0x1d6   : > { %v2484_v36 = vpop.eup %2483  ;;  %1748 = vst.msk [vmem:[%s3014_s26 + $0x50] sm:$0xff] %vm1737_vm1, %v2482_v32  ;;  %2509 = vpow2.f32 %v1960_v29  ;;  %v1174_v37 = vpop.f32.mrf.mxu1 }
 0x1d7   : > { %v2486_v38 = vpop.eup %2485  ;;  %2511 = vrcp.f32 %v1563_v33  ;;  %v1566_v39 = vadd.f32 1.0, %v2484_v36  ;;  %v1962_v40 = vmul.f32 -1.442695, %v1180_v35  ;;  %v1175_v41 = vadd.f32 %v2991_v24, %v1174_v37 }
 0x1d8   : > { %v2488_v42 = vpop.eup %2487  ;;  %1751 = vst.msk [vmem:[%s3014_s26 + $0x68] sm:$0xff] %vm1737_vm1, %v2486_v38  ;;  %2513 = vpow2.f32 %v1959_v34  ;;  %v2330_v43 = vpop.f32.mrf.mxu1 }
 0x1d9   : > { %v2490_v44 = vpop.eup %2489  ;;  %2515 = vrcp.f32 %v1566_v39  ;;  %v1565_v45 = vadd.f32 1.0, %v2488_v42  ;;  %v1961_v46 = vmul.f32 -1.442695, %v1175_v41  ;;  %v1190_v47 = vadd.f32 %v2330_v43, %v2991_v24 }
 0x1da   : > { %v2492_v48 = vpop.eup %2491  ;;  %1750 = vst.msk [vmem:[%s3014_s26 + $0x60] sm:$0xff] %vm1737_vm1, %v2490_v44  ;;  %2517 = vpow2.f32 %v1962_v40  ;;  %v1184_v49 = vpop.f32.mrf.mxu1 }
 0x1db   : > { %v2494_v50 = vpop.eup %2493  ;;  %2519 = vrcp.f32 %v1565_v45  ;;  %v1568_v51 = vadd.f32 1.0, %v2492_v48  ;;  %v1964_v52 = vmul.f32 -1.442695, %v1190_v47  ;;  %v1185_v53 = vadd.f32 %v2991_v24, %v1184_v49 }
 0x1dc   : > { %v2496_v54 = vpop.eup %2495  ;;  %1753 = vst.msk [vmem:[%s3014_s26 + $0x78] sm:$0xff] %vm1737_vm1, %v2494_v50  ;;  %2521 = vpow2.f32 %v1961_v46  ;;  %v2333_v55 = vpop.f32.mrf.mxu1 }
 0x1dd   : > { %v2498_v56 = vpop.eup %2497  ;;  %2523 = vrcp.f32 %v1568_v51  ;;  %v1567_v57 = vadd.f32 1.0, %v2496_v54  ;;  %v1963_v58 = vmul.f32 -1.442695, %v1185_v53  ;;  %v1200_v59 = vadd.f32 %v2333_v55, %v2991_v24 }
 0x1de   : > { %v2500_v60 = vpop.eup %2499  ;;  %1752 = vst.msk [vmem:[%s3014_s26 + $0x70] sm:$0xff] %vm1737_vm1, %v2498_v56  ;;  %2525 = vpow2.f32 %v1964_v52  ;;  %v1194_v61 = vpop.f32.mrf.mxu1 }
 0x1df   : > { %v2502_v62 = vpop.eup %2501  ;;  %1755 = vst.msk [vmem:[%s3014_s26 + $0x88] sm:$0xff] %vm1737_vm1, %v2500_v60  ;;  %2527 = vrcp.f32 %v1567_v57  ;;  %v1966_v63 = vmul.f32 -1.442695, %v1200_v59  ;;  %v1195_v0 = vadd.f32 %v2991_v24, %v1194_v61 }
 0x1e0   : > { %v2504_v1 = vpop.eup %2503  ;;  %v1570_v2 = vadd.f32 1.0, %v2502_v62  ;;  %2529 = vpow2.f32 %v1963_v58  ;;  %v2336_v3 = vpop.f32.mrf.mxu1 }
 0x1e1   : > { %v2506_v4 = vpop.eup %2505  ;;  %1754 = vst.msk [vmem:[%s3014_s26 + $0x80] sm:$0xff] %vm1737_vm1, %v2504_v1  ;;  %2531 = vpow2.f32 %v1966_v63  ;;  %v1965_v5 = vmul.f32 -1.442695, %v1195_v0  ;;  %v1210_v6 = vadd.f32 %v2336_v3, %v2991_v24 }
 0x1e2   : > { %v2508_v7 = vpop.eup %2507  ;;  %2533 = vrcp.f32 %v1570_v2  ;;  %v1569_v8 = vadd.f32 1.0, %v2506_v4  ;;  %v1204_v9 = vpop.f32.mrf.mxu1 }
 0x1e3   : > { %v2510_v10 = vpop.eup %2509  ;;  %1757 = vst.msk [vmem:[%s3014_s26 + $0x98] sm:$0xff] %vm1737_vm1, %v2508_v7  ;;  %2535 = vpow2.f32 %v1965_v5  ;;  %v1968_v11 = vmul.f32 -1.442695, %v1210_v6  ;;  %v1205_v12 = vadd.f32 %v2991_v24, %v1204_v9 }
 0x1e4   : > { %v2512_v13 = vpop.eup %2511  ;;  %2537 = vrcp.f32 %v1569_v8  ;;  %v1572_v14 = vadd.f32 1.0, %v2510_v10  ;;  %v2339_v15 = vpop.f32.mrf.mxu1 }
 0x1e5   : > { %v2514_v16 = vpop.eup %2513  ;;  %1756 = vst.msk [vmem:[%s3014_s26 + $0x90] sm:$0xff] %vm1737_vm1, %v2512_v13  ;;  %2539 = vpow2.f32 %v1968_v11  ;;  %v1967_v17 = vmul.f32 -1.442695, %v1205_v12  ;;  %v1220_v18 = vadd.f32 %v2339_v15, %v2991_v24 }
 0x1e6   : > { %v2516_v19 = vpop.eup %2515  ;;  %2541 = vrcp.f32 %v1572_v14  ;;  %v1571_v21 = vadd.f32 1.0, %v2514_v16  ;;  %v1214_v22 = vpop.f32.mrf.mxu1 }
 0x1e7   : > { %v2518_v23 = vpop.eup %2517  ;;  %1759 = vst.msk [vmem:[%s3014_s26 + $0xa8] sm:$0xff] %vm1737_vm1, %v2516_v19  ;;  %2543 = vpow2.f32 %v1967_v17  ;;  %v1970_v25 = vmul.f32 -1.442695, %v1220_v18  ;;  %v1215_v26 = vadd.f32 %v2991_v24, %v1214_v22 }
 0x1e8   : > { %v2520_v27 = vpop.eup %2519  ;;  %2545 = vrcp.f32 %v1571_v21  ;;  %v1574_v28 = vadd.f32 1.0, %v2518_v23  ;;  %v2342_v29 = vpop.f32.mrf.mxu1 }
 0x1e9   : > { %v2522_v30 = vpop.eup %2521  ;;  %1758 = vst.msk [vmem:[%s3014_s26 + $0xa0] sm:$0xff] %vm1737_vm1, %v2520_v27  ;;  %2547 = vpow2.f32 %v1970_v25  ;;  %v1969_v20 = vmul.f32 -1.442695, %v1215_v26  ;;  %v1230_v31 = vadd.f32 %v2342_v29, %v2991_v24 }
 0x1ea   : > { %v2524_v32 = vpop.eup %2523  ;;  %2549 = vrcp.f32 %v1574_v28  ;;  %v1573_v33 = vadd.f32 1.0, %v2522_v30  ;;  %v1224_v34 = vpop.f32.mrf.mxu1 }
 0x1eb   : > { %v2526_v35 = vpop.eup %2525  ;;  %1761 = vst.msk [vmem:[%s3014_s26 + $0xb8] sm:$0xff] %vm1737_vm1, %v2524_v32  ;;  %2551 = vpow2.f32 %v1969_v20  ;;  %v1972_v36 = vmul.f32 -1.442695, %v1230_v31  ;;  %v1225_v37 = vadd.f32 %v2991_v24, %v1224_v34 }
 0x1ec   : > { %v2528_v38 = vpop.eup %2527  ;;  %2553 = vrcp.f32 %v1573_v33  ;;  %v1576_v39 = vadd.f32 1.0, %v2526_v35  ;;  %v2345_v40 = vpop.f32.mrf.mxu1 }
 0x1ed   : > { %v2530_v41 = vpop.eup %2529  ;;  %1760 = vst.msk [vmem:[%s3014_s26 + $0xb0] sm:$0xff] %vm1737_vm1, %v2528_v38  ;;  %2555 = vpow2.f32 %v1972_v36  ;;  %v1971_v42 = vmul.f32 -1.442695, %v1225_v37  ;;  %v1240_v43 = vadd.f32 %v2345_v40, %v2991_v24 }
 0x1ee   : > { %v2532_v44 = vpop.eup %2531  ;;  %2557 = vrcp.f32 %v1576_v39  ;;  %v1575_v45 = vadd.f32 1.0, %v2530_v41  ;;  %v1234_v46 = vpop.f32.mrf.mxu1 }
 0x1ef   : > { %v2534_v47 = vpop.eup %2533  ;;  %v1578_v48 = vadd.f32 1.0, %v2532_v44  ;;  %2559 = vpow2.f32 %v1971_v42  ;;  %v1974_v49 = vmul.f32 -1.442695, %v1240_v43  ;;  %v1235_v50 = vadd.f32 %v2991_v24, %v1234_v46 }
 0x1f0   : > { %v2536_v51 = vpop.eup %2535  ;;  %1763 = vst.msk [vmem:[%s3014_s26 + $0xc8] sm:$0xff] %vm1737_vm1, %v2534_v47  ;;  %2561 = vrcp.f32 %v1575_v45  ;;  %v2348_v52 = vpop.f32.mrf.mxu1 }
 0x1f1   : > { %v2538_v53 = vpop.eup %2537  ;;  %2563 = vrcp.f32 %v1578_v48  ;;  %v1577_v54 = vadd.f32 1.0, %v2536_v51  ;;  %v1973_v55 = vmul.f32 -1.442695, %v1235_v50  ;;  %v1250_v56 = vadd.f32 %v2348_v52, %v2991_v24 }
 0x1f2   : > { %v2540_v57 = vpop.eup %2539  ;;  %1762 = vst.msk [vmem:[%s3014_s26 + $0xc0] sm:$0xff] %vm1737_vm1, %v2538_v53  ;;  %2565 = vpow2.f32 %v1974_v49  ;;  %v1244_v58 = vpop.f32.mrf.mxu1 }
 0x1f3   : > { %v2542_v59 = vpop.eup %2541  ;;  %2567 = vrcp.f32 %v1577_v54  ;;  %v1580_v60 = vadd.f32 1.0, %v2540_v57  ;;  %v1976_v61 = vmul.f32 -1.442695, %v1250_v56  ;;  %v1245_v62 = vadd.f32 %v2991_v24, %v1244_v58 }
 0x1f4   : > { %v2544_v63 = vpop.eup %2543  ;;  %1765 = vst.msk [vmem:[%s3014_s26 + $0xd8] sm:$0xff] %vm1737_vm1, %v2542_v59  ;;  %2569 = vpow2.f32 %v1973_v55  ;;  %v2351_v0 = vpop.f32.mrf.mxu1 }
 0x1f5   : > { %v2546_v1 = vpop.eup %2545  ;;  %2571 = vrcp.f32 %v1580_v60  ;;  %v1579_v2 = vadd.f32 1.0, %v2544_v63  ;;  %v1975_v3 = vmul.f32 -1.442695, %v1245_v62  ;;  %v1260_v4 = vadd.f32 %v2351_v0, %v2991_v24 }
 0x1f6   : > { %v2548_v5 = vpop.eup %2547  ;;  %1764 = vst.msk [vmem:[%s3014_s26 + $0xd0] sm:$0xff] %vm1737_vm1, %v2546_v1  ;;  %2573 = vpow2.f32 %v1976_v61  ;;  %v1254_v6 = vpop.f32.mrf.mxu1 }
 0x1f7   : > { %v2550_v7 = vpop.eup %2549  ;;  %2575 = vrcp.f32 %v1579_v2  ;;  %v1582_v8 = vadd.f32 1.0, %v2548_v5  ;;  %v1978_v9 = vmul.f32 -1.442695, %v1260_v4  ;;  %v1255_v10 = vadd.f32 %v2991_v24, %v1254_v6 }
 0x1f8   : > { %v2552_v11 = vpop.eup %2551  ;;  %1767 = vst.msk [vmem:[%s3014_s26 + $0xe8] sm:$0xff] %vm1737_vm1, %v2550_v7  ;;  %2577 = vpow2.f32 %v1975_v3  ;;  %v2354_v12 = vpop.f32.mrf.mxu1 }
 0x1f9   : > { %v2554_v13 = vpop.eup %2553  ;;  %2579 = vrcp.f32 %v1582_v8  ;;  %v1581_v14 = vadd.f32 1.0, %v2552_v11  ;;  %v1977_v15 = vmul.f32 -1.442695, %v1255_v10  ;;  %v1270_v16 = vadd.f32 %v2354_v12, %v2991_v24 }
 0x1fa   : > { %v2556_v17 = vpop.eup %2555  ;;  %1766 = vst.msk [vmem:[%s3014_s26 + $0xe0] sm:$0xff] %vm1737_vm1, %v2554_v13  ;;  %2581 = vpow2.f32 %v1978_v9  ;;  %v1264_v18 = vpop.f32.mrf.mxu1 }
 0x1fb   : > { %v2558_v19 = vpop.eup %2557  ;;  %2583 = vrcp.f32 %v1581_v14  ;;  %v1584_v21 = vadd.f32 1.0, %v2556_v17  ;;  %v1980_v22 = vmul.f32 -1.442695, %v1270_v16  ;;  %v1265_v23 = vadd.f32 %v2991_v24, %v1264_v18 }
 0x1fc   : > { %v2560_v25 = vpop.eup %2559  ;;  %1769 = vst.msk [vmem:[%s3014_s26 + $0xf8] sm:$0xff] %vm1737_vm1, %v2558_v19  ;;  %2585 = vpow2.f32 %v1977_v15  ;;  %v2357_v26 = vpop.f32.mrf.mxu1 }
 0x1fd   : > { %v2562_v27 = vpop.eup %2561  ;;  %2587 = vrcp.f32 %v1584_v21  ;;  %v1583_v28 = vadd.f32 1.0, %v2560_v25  ;;  %v1979_v29 = vmul.f32 -1.442695, %v1265_v23  ;;  %v1280_v30 = vadd.f32 %v2357_v26, %v2991_v24 }
 0x1fe   : > { %v2564_v20 = vpop.eup %2563  ;;  %1768 = vst.msk [vmem:[%s3014_s26 + $0xf0] sm:$0xff] %vm1737_vm1, %v2562_v27  ;;  %2589 = vpow2.f32 %v1980_v22  ;;  %v1274_v31 = vpop.f32.mrf.mxu1 }
 0x1ff   : > { %v2566_v32 = vpop.eup %2565  ;;  %1771 = vst.msk [vmem:[%s3014_s26 + $0x108] sm:$0xff] %vm1737_vm1, %v2564_v20  ;;  %2591 = vrcp.f32 %v1583_v28  ;;  %v1982_v33 = vmul.f32 -1.442695, %v1280_v30  ;;  %v1275_v34 = vadd.f32 %v2991_v24, %v1274_v31 }
 0x200   : > { %v2568_v35 = vpop.eup %2567  ;;  %v1586_v36 = vadd.f32 1.0, %v2566_v32  ;;  %2593 = vpow2.f32 %v1979_v29  ;;  %v2360_v37 = vpop.f32.mrf.mxu1 }
 0x201   : > { %v2570_v38 = vpop.eup %2569  ;;  %1770 = vst.msk [vmem:[%s3014_s26 + $0x100] sm:$0xff] %vm1737_vm1, %v2568_v35  ;;  %2595 = vpow2.f32 %v1982_v33  ;;  %v1981_v39 = vmul.f32 -1.442695, %v1275_v34  ;;  %v1290_v40 = vadd.f32 %v2360_v37, %v2991_v24 }
 0x202   : > { %v2572_v41 = vpop.eup %2571  ;;  %2597 = vrcp.f32 %v1586_v36  ;;  %v1585_v42 = vadd.f32 1.0, %v2570_v38  ;;  %v1284_v43 = vpop.f32.mrf.mxu1 }
 0x203   : > { %v2574_v44 = vpop.eup %2573  ;;  %1773 = vst.msk [vmem:[%s3014_s26 + $0x118] sm:$0xff] %vm1737_vm1, %v2572_v41  ;;  %2599 = vpow2.f32 %v1981_v39  ;;  %v1984_v45 = vmul.f32 -1.442695, %v1290_v40  ;;  %v1285_v46 = vadd.f32 %v2991_v24, %v1284_v43 }
 0x204   : > { %v2576_v47 = vpop.eup %2575  ;;  %2601 = vrcp.f32 %v1585_v42  ;;  %v1588_v48 = vadd.f32 1.0, %v2574_v44  ;;  %v2363_v49 = vpop.f32.mrf.mxu1 }
 0x205   : > { %v2578_v50 = vpop.eup %2577  ;;  %1772 = vst.msk [vmem:[%s3014_s26 + $0x110] sm:$0xff] %vm1737_vm1, %v2576_v47  ;;  %2603 = vpow2.f32 %v1984_v45  ;;  %v1983_v51 = vmul.f32 -1.442695, %v1285_v46  ;;  %v1300_v52 = vadd.f32 %v2363_v49, %v2991_v24 }
 0x206   : > { %v2580_v53 = vpop.eup %2579  ;;  %2605 = vrcp.f32 %v1588_v48  ;;  %v1587_v54 = vadd.f32 1.0, %v2578_v50  ;;  %v1294_v55 = vpop.f32.mrf.mxu1 }
 0x207   : > { %v2582_v56 = vpop.eup %2581  ;;  %1775 = vst.msk [vmem:[%s3014_s26 + $0x128] sm:$0xff] %vm1737_vm1, %v2580_v53  ;;  %2607 = vpow2.f32 %v1983_v51  ;;  %v1986_v57 = vmul.f32 -1.442695, %v1300_v52  ;;  %v1295_v58 = vadd.f32 %v2991_v24, %v1294_v55 }
 0x208   : > { %v2584_v59 = vpop.eup %2583  ;;  %2609 = vrcp.f32 %v1587_v54  ;;  %v1590_v60 = vadd.f32 1.0, %v2582_v56  ;;  %v2366_v61 = vpop.f32.mrf.mxu1 }
 0x209   : > { %v2586_v62 = vpop.eup %2585  ;;  %1774 = vst.msk [vmem:[%s3014_s26 + $0x120] sm:$0xff] %vm1737_vm1, %v2584_v59  ;;  %2611 = vpow2.f32 %v1986_v57  ;;  %v1985_v63 = vmul.f32 -1.442695, %v1295_v58  ;;  %v1310_v0 = vadd.f32 %v2366_v61, %v2991_v24 }
 0x20a   : > { %v2588_v1 = vpop.eup %2587  ;;  %2613 = vrcp.f32 %v1590_v60  ;;  %v1589_v2 = vadd.f32 1.0, %v2586_v62  ;;  %v1304_v3 = vpop.f32.mrf.mxu1 }
 0x20b   : > { %v2590_v4 = vpop.eup %2589  ;;  %1777 = vst.msk [vmem:[%s3014_s26 + $0x138] sm:$0xff] %vm1737_vm1, %v2588_v1  ;;  %2615 = vpow2.f32 %v1985_v63  ;;  %v1988_v5 = vmul.f32 -1.442695, %v1310_v0  ;;  %v1305_v6 = vadd.f32 %v2991_v24, %v1304_v3 }
 0x20c   : > { %v2592_v7 = vpop.eup %2591  ;;  %2617 = vrcp.f32 %v1589_v2  ;;  %v1592_v8 = vadd.f32 1.0, %v2590_v4  ;;  %v2369_v9 = vpop.f32.mrf.mxu1 }
 0x20d   : > { %v2594_v10 = vpop.eup %2593  ;;  %1776 = vst.msk [vmem:[%s3014_s26 + $0x130] sm:$0xff] %vm1737_vm1, %v2592_v7  ;;  %2619 = vpow2.f32 %v1988_v5  ;;  %v1987_v11 = vmul.f32 -1.442695, %v1305_v6  ;;  %v1320_v12 = vadd.f32 %v2369_v9, %v2991_v24 }
 0x20e   : > { %v2596_v13 = vpop.eup %2595  ;;  %2621 = vrcp.f32 %v1592_v8  ;;  %v1591_v14 = vadd.f32 1.0, %v2594_v10  ;;  %v1314_v15 = vpop.f32.mrf.mxu1 }
 0x20f   : > { %v2598_v16 = vpop.eup %2597  ;;  %v1594_v17 = vadd.f32 1.0, %v2596_v13  ;;  %2623 = vpow2.f32 %v1987_v11  ;;  %v1990_v18 = vmul.f32 -1.442695, %v1320_v12  ;;  %v1315_v19 = vadd.f32 %v2991_v24, %v1314_v15 }
 0x210   : > { %v2600_v21 = vpop.eup %2599  ;;  %1779 = vst.msk [vmem:[%s3014_s26 + $0x148] sm:$0xff] %vm1737_vm1, %v2598_v16  ;;  %2625 = vrcp.f32 %v1591_v14  ;;  %v2372_v22 = vpop.f32.mrf.mxu1 }
 0x211   : > { %v2602_v23 = vpop.eup %2601  ;;  %2627 = vrcp.f32 %v1594_v17  ;;  %v1593_v25 = vadd.f32 1.0, %v2600_v21  ;;  %v1989_v26 = vmul.f32 -1.442695, %v1315_v19  ;;  %v1330_v27 = vadd.f32 %v2372_v22, %v2991_v24 }
 0x212   : > { %v2604_v28 = vpop.eup %2603  ;;  %1778 = vst.msk [vmem:[%s3014_s26 + $0x140] sm:$0xff] %vm1737_vm1, %v2602_v23  ;;  %2629 = vpow2.f32 %v1990_v18  ;;  %v1324_v29 = vpop.f32.mrf.mxu1 }
 0x213   : > { %v2606_v30 = vpop.eup %2605  ;;  %2631 = vrcp.f32 %v1593_v25  ;;  %v1596_v20 = vadd.f32 1.0, %v2604_v28  ;;  %v1992_v31 = vmul.f32 -1.442695, %v1330_v27  ;;  %v1325_v32 = vadd.f32 %v2991_v24, %v1324_v29 }
 0x214   : > { %v2608_v33 = vpop.eup %2607  ;;  %1781 = vst.msk [vmem:[%s3014_s26 + $0x158] sm:$0xff] %vm1737_vm1, %v2606_v30  ;;  %2633 = vpow2.f32 %v1989_v26  ;;  %v2375_v34 = vpop.f32.mrf.mxu1 }
 0x215   : > { %v2610_v35 = vpop.eup %2609  ;;  %2635 = vrcp.f32 %v1596_v20  ;;  %v1595_v36 = vadd.f32 1.0, %v2608_v33  ;;  %v1991_v37 = vmul.f32 -1.442695, %v1325_v32  ;;  %v1340_v38 = vadd.f32 %v2375_v34, %v2991_v24 }
 0x216   : > { %v2612_v39 = vpop.eup %2611  ;;  %1780 = vst.msk [vmem:[%s3014_s26 + $0x150] sm:$0xff] %vm1737_vm1, %v2610_v35  ;;  %2637 = vpow2.f32 %v1992_v31  ;;  %v1334_v40 = vpop.f32.mrf.mxu1 }
 0x217   : > { %v2614_v41 = vpop.eup %2613  ;;  %2639 = vrcp.f32 %v1595_v36  ;;  %v1598_v42 = vadd.f32 1.0, %v2612_v39  ;;  %v1994_v43 = vmul.f32 -1.442695, %v1340_v38  ;;  %v1335_v44 = vadd.f32 %v2991_v24, %v1334_v40 }
 0x218   : > { %v2616_v45 = vpop.eup %2615  ;;  %1783 = vst.msk [vmem:[%s3014_s26 + $0x168] sm:$0xff] %vm1737_vm1, %v2614_v41  ;;  %2641 = vpow2.f32 %v1991_v37  ;;  %v2378_v46 = vpop.f32.mrf.mxu1 }
 0x219   : > { %v2618_v47 = vpop.eup %2617  ;;  %2643 = vrcp.f32 %v1598_v42  ;;  %v1597_v48 = vadd.f32 1.0, %v2616_v45  ;;  %v1993_v49 = vmul.f32 -1.442695, %v1335_v44  ;;  %v1350_v50 = vadd.f32 %v2378_v46, %v2991_v24 }
 0x21a   : > { %v2620_v51 = vpop.eup %2619  ;;  %1782 = vst.msk [vmem:[%s3014_s26 + $0x160] sm:$0xff] %vm1737_vm1, %v2618_v47  ;;  %2645 = vpow2.f32 %v1994_v43  ;;  %v1344_v52 = vpop.f32.mrf.mxu1 }
 0x21b   : > { %v2622_v53 = vpop.eup %2621  ;;  %2647 = vrcp.f32 %v1597_v48  ;;  %v1600_v54 = vadd.f32 1.0, %v2620_v51  ;;  %v1996_v55 = vmul.f32 -1.442695, %v1350_v50  ;;  %v1345_v56 = vadd.f32 %v2991_v24, %v1344_v52 }
 0x21c   : > { %v2624_v57 = vpop.eup %2623  ;;  %1785 = vst.msk [vmem:[%s3014_s26 + $0x178] sm:$0xff] %vm1737_vm1, %v2622_v53  ;;  %2649 = vpow2.f32 %v1993_v49 }
 0x21d   : > { %v2626_v58 = vpop.eup %2625  ;;  %2651 = vrcp.f32 %v1600_v54  ;;  %v1599_v59 = vadd.f32 1.0, %v2624_v57  ;;  %v1995_v60 = vmul.f32 -1.442695, %v1345_v56 }
 0x21e   : > { %v2628_v61 = vpop.eup %2627  ;;  %1784 = vst.msk [vmem:[%s3014_s26 + $0x170] sm:$0xff] %vm1737_vm1, %v2626_v58  ;;  %2653 = vpow2.f32 %v1996_v55 }
 0x21f   : > { %v2630_v62 = vpop.eup %2629  ;;  %1787 = vst.msk [vmem:[%s3014_s26 + $0x188] sm:$0xff] %vm1737_vm1, %v2628_v61  ;;  %2655 = vrcp.f32 %v1599_v59 }
 0x220   : > { %v2632_v24 = vpop.eup %2631  ;;  %v1602_v63 = vadd.f32 1.0, %v2630_v62  ;;  %2657 = vpow2.f32 %v1995_v60 }
 0x221   : > { %v2634_v0 = vpop.eup %2633  ;;  %1786 = vst.msk [vmem:[%s3014_s26 + $0x180] sm:$0xff] %vm1737_vm1, %v2632_v24 }
 0x222   : > { %v2636_v1 = vpop.eup %2635  ;;  %2659 = vrcp.f32 %v1602_v63  ;;  %v1601_v2 = vadd.f32 1.0, %v2634_v0 }
 0x223   : > { %v2638_v3 = vpop.eup %2637  ;;  %1789 = vst.msk [vmem:[%s3014_s26 + $0x198] sm:$0xff] %vm1737_vm1, %v2636_v1 }
 0x224   : > { %v2640_v4 = vpop.eup %2639  ;;  %2661 = vrcp.f32 %v1601_v2  ;;  %v1604_v5 = vadd.f32 1.0, %v2638_v3 }
 0x225   : > { %v2642_v6 = vpop.eup %2641  ;;  %1788 = vst.msk [vmem:[%s3014_s26 + $0x190] sm:$0xff] %vm1737_vm1, %v2640_v4 }
 0x226   : > { %v2644_v7 = vpop.eup %2643  ;;  %2663 = vrcp.f32 %v1604_v5  ;;  %v1603_v8 = vadd.f32 1.0, %v2642_v6 }
 0x227   : > { %v2646_v9 = vpop.eup %2645  ;;  %1791 = vst.msk [vmem:[%s3014_s26 + $0x1a8] sm:$0xff] %vm1737_vm1, %v2644_v7 }
 0x228   : > { %v2648_v10 = vpop.eup %2647  ;;  %2665 = vrcp.f32 %v1603_v8  ;;  %v1606_v11 = vadd.f32 1.0, %v2646_v9 }
 0x229   : > { %v2650_v12 = vpop.eup %2649  ;;  %1790 = vst.msk [vmem:[%s3014_s26 + $0x1a0] sm:$0xff] %vm1737_vm1, %v2648_v10 }
 0x22a   : > { %v2652_v13 = vpop.eup %2651  ;;  %2667 = vrcp.f32 %v1606_v11  ;;  %v1605_v14 = vadd.f32 1.0, %v2650_v12 }
 0x22b   : > { %v2654_v15 = vpop.eup %2653  ;;  %1793 = vst.msk [vmem:[%s3014_s26 + $0x1b8] sm:$0xff] %vm1737_vm1, %v2652_v13 }
 0x22c   : > { %v2656_v16 = vpop.eup %2655  ;;  %2669 = vrcp.f32 %v1605_v14  ;;  %v1608_v17 = vadd.f32 1.0, %v2654_v15 }
 0x22d   : > { %v2658_v18 = vpop.eup %2657  ;;  %1792 = vst.msk [vmem:[%s3014_s26 + $0x1b0] sm:$0xff] %vm1737_vm1, %v2656_v16 }
 0x22e   : > { %2671 = vrcp.f32 %v1608_v17  ;;  %v1607_v19 = vadd.f32 1.0, %v2658_v18 }
 0x22f   : > { %v2660_v21 = vpop.eup %2659 }
 0x230   : > { %1795 = vst.msk [vmem:[%s3014_s26 + $0x1c8] sm:$0xff] %vm1737_vm1, %v2660_v21  ;;  %2673 = vrcp.f32 %v1607_v19 }
 0x231   : > { %v2662_v22 = vpop.eup %2661 }
 0x232   : > { %1794 = vst.msk [vmem:[%s3014_s26 + $0x1c0] sm:$0xff] %vm1737_vm1, %v2662_v22 }
 0x233   : > { %v2664_v23 = vpop.eup %2663 }
 0x234   : > { %1797 = vst.msk [vmem:[%s3014_s26 + $0x1d8] sm:$0xff] %vm1737_vm1, %v2664_v23 }
 0x235   : > { %v2666_v25 = vpop.eup %2665 }
 0x236   : > { %1796 = vst.msk [vmem:[%s3014_s26 + $0x1d0] sm:$0xff] %vm1737_vm1, %v2666_v25 }
 0x237   : > { %v2668_v26 = vpop.eup %2667 }
 0x238   : > { %1799 = vst.msk [vmem:[%s3014_s26 + $0x1e8] sm:$0xff] %vm1737_vm1, %v2668_v26 }
 0x239   : > { %v2670_v27 = vpop.eup %2669 }
 0x23a   : > { %1798 = vst.msk [vmem:[%s3014_s26 + $0x1e0] sm:$0xff] %vm1737_vm1, %v2670_v27 }
 0x23b   : > { %v2672_v28 = vpop.eup %2671 }
 0x23c   : > { %1801 = vst.msk [vmem:[%s3014_s26 + $0x1f8] sm:$0xff] %vm1737_vm1, %v2672_v28 }
 0x23d   : > { %v2674_v29 = vpop.eup %2673 }
 0x23e   : > { %1800 = vst.msk [vmem:[%s3014_s26 + $0x1f0] sm:$0xff] %vm1737_vm1, %v2674_v29 }
 0x23f PF: > { %s15_s18 = sadd.s32 1, %s2681_s18  }
 0x240   : > { %p12_p4 = scmp.ge.s32.totalorder %s15_s18, 4  }
 0x242   :  { %14 = sbr.rel (!%p12_p4) target bundleno = 1 (0x1), region = 70 }

</bundles_post_ra>
